<compile_context>
chip_gen: v6e
topology: v6e:2x2x1
jax: 0.10.0
libtpu: 0.0.40
codegen_flags: <defaults>
</compile_context>

<pallas_src>
import math
import functools

import numpy as np
import jax
import jax.numpy as jnp
from jax.experimental import pallas as pl
from jax.experimental.pallas import tpu as pltpu

# ----------------------------- synthetic config -----------------------------
IMG_SIZE = 32                 # crop_size / base_resolution (real model: 448)
PATCH = 4                     # patch size (real model: 14)
GRID = IMG_SIZE // PATCH      # 8 -> pos-emb grid 8x8 (even -> no reflection pad)
NUM_PATCHES = GRID * GRID     # 64
C_IN = 3
K_RAW = C_IN * PATCH * PATCH  # 48
K_PAD = 128                   # patch-embed contraction padded to a full MXU pass
D = 128                       # image_dim_out (real model: 1152)
NH = 2                        # attention heads of the ViT stand-in
DH = D // NH
MLP = 256
NUM_LAYERS = 2
HIDDEN = 128                  # language-model hidden size (dim_projection)
LAYER_IDX = -2                # config.img_processor.layer_idx default
BASE_FEAT_TARGET = GRID // 2  # base_feat_height_target after //2 -> 4
NUM_IMG_TOKENS = BASE_FEAT_TARGET ** 2   # 16
BASE_FEAT_HEIGHT_REDUCTION = 1

# Number of encoder layers that hidden_states[LAYER_IDX] actually depends on.
NUM_LAYERS_USED = (NUM_LAYERS + 1 + LAYER_IDX) if LAYER_IDX < 0 else LAYER_IDX


def _round_up(x, m):
    return (x + m - 1) // m * m


def _make_pool_matrix_np():
    # AvgPool2d(2,2) over the GRIDxGRID token grid expressed as a matrix.
    g2 = GRID // 2
    P = np.zeros((g2 * g2, NUM_PATCHES), np.float32)
    for oi in range(g2):
        for oj in range(g2):
            o = oi * g2 + oj
            for di in range(2):
                for dj in range(2):
                    P[o, (2 * oi + di) * GRID + (2 * oj + dj)] = 0.25
    return P


_POOL_MAT_NP = _make_pool_matrix_np()


# ----------------------- fused per-crop ViT + pool kernel --------------------
def _fused_vit_crop_kernel(patches_ref, patch_w_ref, patch_b_ref, pos_ref,
                           bias_ref, ln1g_ref, ln1b_ref, wqkv_ref, bqkv_ref,
                           wo_ref, bo_ref, ln2g_ref, ln2b_ref, w1_ref, b1_ref,
                           w2_ref, b2_ref, pool_ref, o_ref):
    inv_sqrt2 = 1.0 / math.sqrt(2.0)

    def gelu(x):  # exact (erf) GELU, matching torch.nn.GELU() default
        return 0.5 * x * (1.0 + jax.lax.erf(x * inv_sqrt2))

    def layer_norm(x, g, b, eps=1e-6):
        mu = jnp.mean(x, axis=-1, keepdims=True)
        var = jnp.mean((x - mu) ** 2, axis=-1, keepdims=True)
        return (x - mu) * jax.lax.rsqrt(var + eps) * g + b

    # patch embedding (contraction zero-padded to K_PAD) + position embedding
    x = patches_ref[0].astype(jnp.bfloat16)                          # (S, K_PAD)
    h = jnp.dot(x, patch_w_ref[...], preferred_element_type=jnp.float32)
    h = h + patch_b_ref[...] + pos_ref[...]                          # (S, D) f32

    bias = bias_ref[0]                                               # (1, S)
    scale = 1.0 / math.sqrt(DH)
    n_layers = wqkv_ref.shape[0]                                     # static

    for l in range(n_layers):          # static unroll; weights stay in VMEM
        # ------------------------- self-attention -------------------------
        res = h
        hn = layer_norm(h, ln1g_ref[l], ln1b_ref[l]).astype(jnp.bfloat16)
        qkv = jnp.dot(hn, wqkv_ref[l],
                      preferred_element_type=jnp.float32) + bqkv_ref[l]  # (S,3D)
        heads = []
        for hh in range(NH):           # both heads in-kernel
            q = qkv[:, hh * DH:(hh + 1) * DH].astype(jnp.bfloat16)
            k = qkv[:, D + hh * DH:D + (hh + 1) * DH].astype(jnp.bfloat16)
            v = qkv[:, 2 * D + hh * DH:2 * D + (hh + 1) * DH].astype(jnp.bfloat16)
            s = jax.lax.dot_general(q, k, (((1,), (1,)), ((), ())),
                                    preferred_element_type=jnp.float32)
            s = s * scale + bias       # additive key mask, broadcast over queries
            m = jnp.max(s, axis=-1, keepdims=True)
            p = jnp.exp(s - m)
            p = p * pl.reciprocal(jnp.sum(p, axis=-1, keepdims=True), approx=True)
            heads.append(jnp.dot(p.astype(jnp.bfloat16), v,
                                 preferred_element_type=jnp.float32))
        attn = jnp.concatenate(heads, axis=-1).astype(jnp.bfloat16)  # (S, D)
        attn = jnp.dot(attn, wo_ref[l],
                       preferred_element_type=jnp.float32) + bo_ref[l]
        h = res + attn
        # ------------------------------ MLP --------------------------------
        res = h
        hn = layer_norm(h, ln2g_ref[l], ln2b_ref[l]).astype(jnp.bfloat16)
        m1 = jnp.dot(hn, w1_ref[l],
                     preferred_element_type=jnp.float32) + b1_ref[l]
        m1 = gelu(m1).astype(jnp.bfloat16)
        m2 = jnp.dot(m1, w2_ref[l],
                     preferred_element_type=jnp.float32) + b2_ref[l]
        h = res + m2

    # h == hidden_states[LAYER_IDX] (layer loop is truncated at the layer that
    # produces it).  AvgPool2d(2,2) over the 8x8 token grid as a (16,64)x(64,D)
    # matmul epilogue -> lane-dense (16, 128) output block.
    pooled = jnp.dot(pool_ref[...], h, preferred_element_type=jnp.float32)
    o_ref[0] = pooled.astype(o_ref.dtype)


def _patchify_pad(pixel_bchw):
    """NCHW crops -> (B, NUM_PATCHES, K_PAD) row-major patches, K zero-padded."""
    B = pixel_bchw.shape[0]
    x = pixel_bchw.reshape(B, C_IN, GRID, PATCH, GRID, PATCH)
    x = x.transpose(0, 2, 4, 1, 3, 5).reshape(B, NUM_PATCHES, K_RAW)
    return jnp.pad(x, ((0, 0), (0, 0), (0, K_PAD - K_RAW)))


def _prepare_backbone_weights(params):
    """Stack the used encoder layers; matmul weights -> bf16 (f32 accum in-kernel)."""
    layers = params['layers'][:NUM_LAYERS_USED]
    patch_w = jnp.pad(params['patch_w'],
                      ((0, K_PAD - K_RAW), (0, 0))).astype(jnp.bfloat16)
    patch_b = params['patch_b'].reshape(1, D)
    pos = params['pos']
    stack = lambda key: jnp.stack([lp[key] for lp in layers])
    wqkv = jnp.stack([jnp.concatenate([lp['wq'], lp['wk'], lp['wv']], axis=1)
                      for lp in layers]).astype(jnp.bfloat16)            # (L, D, 3D)
    bqkv = jnp.stack([jnp.concatenate([lp['bq'], lp['bk'], lp['bv']])[None, :]
                      for lp in layers])                                 # (L, 1, 3D)
    wo = stack('wo').astype(jnp.bfloat16)
    bo = stack('bo')[:, None, :]
    ln1g = stack('ln1_g')[:, None, :]
    ln1b = stack('ln1_b')[:, None, :]
    ln2g = stack('ln2_g')[:, None, :]
    ln2b = stack('ln2_b')[:, None, :]
    w1 = stack('w1').astype(jnp.bfloat16)
    b1 = stack('b1')[:, None, :]
    w2 = stack('w2').astype(jnp.bfloat16)
    b2 = stack('b2')[:, None, :]
    return (patch_w, patch_b, pos, ln1g, ln1b, wqkv, bqkv, wo, bo,
            ln2g, ln2b, w1, b1, w2, b2)


@jax.jit
def _compute_crop_features(flat_pix, flat_mask, params):
    """(B, C, H, W) crops -> (B, NUM_IMG_TOKENS, D) pooled ViT features."""
    B = flat_pix.shape[0]
    patches = _patchify_pad(flat_pix)                                   # (B,S,K_PAD)
    bias = jnp.where(flat_mask[:, None, :], 0.0, -1e9).astype(jnp.float32)
    (patch_w, patch_b, pos, ln1g, ln1b, wqkv, bqkv, wo, bo,
     ln2g, ln2b, w1, b1, w2, b2) = _prepare_backbone_weights(params)
    pool_mat = jnp.asarray(_POOL_MAT_NP)

    def bcast(arr):  # full-array block, broadcast across the crop grid
        z = (0,) * arr.ndim
        return pl.BlockSpec(arr.shape, lambda b, _z=z: _z)

    return pl.pallas_call(
        _fused_vit_crop_kernel,
        out_shape=jax.ShapeDtypeStruct((B, NUM_IMG_TOKENS, D), jnp.float32),
        grid=(B,),
        in_specs=[
            pl.BlockSpec((1, NUM_PATCHES, K_PAD), lambda b: (b, 0, 0)),   # patches
            bcast(patch_w), bcast(patch_b), bcast(pos),
            pl.BlockSpec((1, 1, NUM_PATCHES), lambda b: (b, 0, 0)),       # key bias
            bcast(ln1g), bcast(ln1b), bcast(wqkv), bcast(bqkv),
            bcast(wo), bcast(bo), bcast(ln2g), bcast(ln2b),
            bcast(w1), bcast(b1), bcast(w2), bcast(b2),
            bcast(pool_mat),
        ],
        out_specs=pl.BlockSpec((1, NUM_IMG_TOKENS, D), lambda b: (b, 0, 0)),
        compiler_params=pltpu.CompilerParams(
            dimension_semantics=("parallel",)),     # crops shard across v7x TCs
    )(patches, patch_w, patch_b, pos, bias, ln1g, ln1b, wqkv, bqkv,
      wo, bo, ln2g, ln2b, w1, b1, w2, b2, pool_mat)


# --------------------- fused img_projection (Linear-GELU-Linear) -------------
def _proj_kernel(x_ref, w1_ref, b1_ref, w2_ref, b2_ref, o_ref):
    h = jnp.dot(x_ref[...].astype(jnp.bfloat16), w1_ref[...],
                preferred_element_type=jnp.float32) + b1_ref[...]
    h = 0.5 * h * (1.0 + jax.lax.erf(h * (1.0 / math.sqrt(2.0))))
    h = jnp.dot(h.astype(jnp.bfloat16), w2_ref[...],
                preferred_element_type=jnp.float32) + b2_ref[...]
    o_ref[...] = h.astype(o_ref.dtype)


def pallas_img_projection(x, w1, b1, w2, b2, tm=128):
    """x: (M, C) tokens of all images concatenated -> (M, HIDDEN)."""
    M, C = x.shape
    Mp = _round_up(M, tm)
    xp = jnp.pad(x, ((0, Mp - M), (0, 0))) if Mp != M else x
    out = pl.pallas_call(
        _proj_kernel,
        out_shape=jax.ShapeDtypeStruct((Mp, HIDDEN), jnp.float32),
        grid=(Mp // tm,),
        in_specs=[
            pl.BlockSpec((tm, C), lambda i: (i, 0)),
            pl.BlockSpec((C, HIDDEN), lambda i: (0, 0)),
            pl.BlockSpec((1, HIDDEN), lambda i: (0, 0)),
            pl.BlockSpec((HIDDEN, HIDDEN), lambda i: (0, 0)),
            pl.BlockSpec((1, HIDDEN), lambda i: (0, 0)),
        ],
        out_specs=pl.BlockSpec((tm, HIDDEN), lambda i: (i, 0)),
        compiler_params=pltpu.CompilerParams(dimension_semantics=("parallel",)),
    )(xp, w1, b1, w2, b2)
    return out[:M]


# --------------------------- Phi4MMImageEncoder ------------------------------
def phi4mm_image_encoder_forward(pixel_values, image_sizes, image_attention_mask,
                                 params):
    """
    pixel_values        : (num_images, num_crops, C_IN, IMG_SIZE, IMG_SIZE) NCHW
    image_sizes         : (num_images, 2) host ints
    image_attention_mask: (num_images, num_crops, GRID, GRID)
    returns: list of (1, len_i, HIDDEN) arrays (one per image, 'sub_glb' order)
    """
    num_images, num_crops = pixel_values.shape[:2]
    bs = num_images
    flat_pix = jnp.asarray(pixel_values).reshape(
        num_images * num_crops, C_IN, IMG_SIZE, IMG_SIZE)
    flat_mask = jnp.asarray(image_attention_mask).reshape(
        num_images * num_crops, NUM_PATCHES) != 0

    # one fused pallas_call: patch embed -> ViT layers -> avg-pool, per crop
    img_features = _compute_crop_features(flat_pix, flat_mask, params)
    img_features = img_features.reshape(bs, num_crops, NUM_IMG_TOKENS, D)

    H = BASE_FEAT_TARGET      # 4
    C = D
    sub_GN = params['sub_GN']     # (1, 1, 1, C)
    glb_GN = params['glb_GN']     # (1, 1, C)
    img_sizes_np = np.asarray(image_sizes).reshape(-1, 2)
    mask_np = np.asarray(image_attention_mask)

    # HD transform (host-int dependent shapes -> host/XLA glue, tiny data)
    seqs, lens = [], []
    for _bs in range(bs):
        h_ = int(img_sizes_np[_bs, 0]) // IMG_SIZE
        w_ = int(img_sizes_np[_bs, 1]) // IMG_SIZE
        B_ = h_ * w_

        # global crop (base_feat_height_reduction == 1 -> reshapes collapse)
        glb = img_features[_bs, :1].reshape(1, H, H, C)
        temp_glb_GN = jnp.tile(sub_GN, (1, H, 1, 1))
        glb_img = jnp.concatenate([glb, temp_glb_GN], axis=2).reshape(1, -1, C)

        # sub crops
        sub = img_features[_bs, 1:1 + B_].reshape(B_, H, H, C)
        sub = sub.reshape(1, h_, w_, H, H, C).transpose(0, 1, 3, 2, 4, 5)
        sub = sub.reshape(1, h_ * H, w_ * H, C)

        rmask = mask_np[_bs, 1:B_ + 1, 0::2, 0::2].reshape(1, h_, w_, H, H)
        rmask = rmask.transpose(0, 1, 3, 2, 4).reshape(1, h_ * H, w_ * H)
        useful_height = int(rmask[0, :, 0].sum())
        useful_width = int(rmask[0, 0, :].sum())
        sub = sub[:, :useful_height, :useful_width]
        temp_sub_GN = jnp.tile(sub_GN, (1, useful_height, 1, 1))
        temp_len = int(mask_np[_bs, :B_ + 1, 0::2, 0::2].sum()) + (useful_height + 1) + H
        sub_img = jnp.concatenate([sub, temp_sub_GN], axis=2).reshape(1, -1, C)

        # hd_transform_order == 'sub_glb'
        out_img = jnp.concatenate([sub_img, glb_GN, glb_img], axis=1)
        assert temp_len == out_img.shape[1], (temp_len, out_img.shape)
        seqs.append(out_img[0])
        lens.append(temp_len)

    # img_projection: one fused Linear-GELU-Linear over ALL images' tokens
    all_tokens = jnp.concatenate(seqs, axis=0)            # (sum(lens), C)
    proj = pallas_img_projection(
        all_tokens,
        params['proj_w1'].astype(jnp.bfloat16), params['proj_b1'].reshape(1, -1),
        params['proj_w2'].astype(jnp.bfloat16), params['proj_b2'].reshape(1, -1))

    outputs, off = [], 0
    for L_ in lens:
        outputs.append(proj[off:off + L_].reshape(1, L_, HIDDEN))
        off += L_
    return outputs


# ------------------------------- parameters ----------------------------------
def init_params(key):
    keys = iter(jax.random.split(key, 64))

    def nrm(shape, s=0.02):
        return s * jax.random.normal(next(keys), shape, jnp.float32)

    params = {
        'patch_w': nrm((K_RAW, D)),
        'patch_b': jnp.zeros((D,), jnp.float32),
        'pos': nrm((NUM_PATCHES, D)),
        # module __init__ creates these as zeros; random here for non-trivial output
        'glb_GN': nrm((1, 1, D * BASE_FEAT_HEIGHT_REDUCTION ** 2)),
        'sub_GN': nrm((1, 1, 1, D * BASE_FEAT_HEIGHT_REDUCTION ** 2)),
        'proj_w1': nrm((D * BASE_FEAT_HEIGHT_REDUCTION ** 2, HIDDEN)),
        'proj_b1': jnp.zeros((HIDDEN,), jnp.float32),
        'proj_w2': nrm((HIDDEN, HIDDEN)),
        'proj_b2': jnp.zeros((HIDDEN,), jnp.float32),
        'layers': [],
    }
    for _ in range(NUM_LAYERS):
        params['layers'].append({
            'ln1_g': jnp.ones((D,), jnp.float32), 'ln1_b': jnp.zeros((D,), jnp.float32),
            'wq': nrm((D, D)), 'bq': jnp.zeros((D,), jnp.float32),
            'wk': nrm((D, D)), 'bk': jnp.zeros((D,), jnp.float32),
            'wv': nrm((D, D)), 'bv': jnp.zeros((D,), jnp.float32),
            'wo': nrm((D, D)), 'bo': jnp.zeros((D,), jnp.float32),
            'ln2_g': jnp.ones((D,), jnp.float32), 'ln2_b': jnp.zeros((D,), jnp.float32),
            'w1': nrm((D, MLP)), 'b1': jnp.zeros((MLP,), jnp.float32),
            'w2': nrm((MLP, D)), 'b2': jnp.zeros((D,), jnp.float32),
        })
    return params


if __name__ == "__main__":
    key = jax.random.PRNGKey(0)
    k_param, k_pix = jax.random.split(key)
    params = init_params(k_param)

    num_images, num_crops = 2, 3
    pixel_values = jax.random.normal(
        k_pix, (num_images, num_crops, C_IN, IMG_SIZE, IMG_SIZE), jnp.float32)
    # image 0 is 2x1 crops (64x32), image 1 is 1x1 (32x32)
    image_sizes = np.array([[2 * IMG_SIZE, IMG_SIZE], [IMG_SIZE, IMG_SIZE]], np.int64)
    image_attention_mask = np.ones((num_images, num_crops, GRID, GRID), np.float32)

    outs = phi4mm_image_encoder_forward(pixel_values, image_sizes,
                                        image_attention_mask, params)
    for o in outs:
        jax.block_until_ready(o)

    # expected token counts: image0 -> 61, image1 -> 41 (see temp_len formula)
    assert outs[0].shape == (1, 61, HIDDEN), outs[0].shape
    assert outs[1].shape == (1, 41, HIDDEN), outs[1].shape
    assert all(bool(jnp.all(jnp.isfinite(o))) for o in outs)
    print("KERNEL_OK")
</pallas_src>

<mosaic_0001>
module attributes {stable_mosaic.version = 11 : i64} {
  func.func @_fused_vit_crop_kernel(%arg0: i32, %arg1: memref<1x64x128xf32, #tpu.memory_space<vmem>>, %arg2: memref<128x128xbf16, #tpu.memory_space<vmem>>, %arg3: memref<1x128xf32, #tpu.memory_space<vmem>>, %arg4: memref<64x128xf32, #tpu.memory_space<vmem>>, %arg5: memref<1x1x64xf32, #tpu.memory_space<vmem>>, %arg6: memref<1x1x128xf32, #tpu.memory_space<vmem>>, %arg7: memref<1x1x128xf32, #tpu.memory_space<vmem>>, %arg8: memref<1x128x384xbf16, #tpu.memory_space<vmem>>, %arg9: memref<1x1x384xf32, #tpu.memory_space<vmem>>, %arg10: memref<1x128x128xbf16, #tpu.memory_space<vmem>>, %arg11: memref<1x1x128xf32, #tpu.memory_space<vmem>>, %arg12: memref<1x1x128xf32, #tpu.memory_space<vmem>>, %arg13: memref<1x1x128xf32, #tpu.memory_space<vmem>>, %arg14: memref<1x128x256xbf16, #tpu.memory_space<vmem>>, %arg15: memref<1x1x256xf32, #tpu.memory_space<vmem>>, %arg16: memref<1x256x128xbf16, #tpu.memory_space<vmem>>, %arg17: memref<1x1x128xf32, #tpu.memory_space<vmem>>, %arg18: memref<16x64xf32, #tpu.memory_space<vmem>>, %arg19: memref<1x16x128xf32, #tpu.memory_space<vmem>>) attributes {dimension_semantics = [#tpu.dimension_semantics<parallel>], iteration_bounds = array<i64: 6>, scalar_prefetch = 0 : i64, scratch_operands = 0 : i64, tpu.core_type = #tpu.core_type<tc>, window_params = [{transform_indices = @transform_0, window_bounds = array<i64: 1, 64, 128>}, {pipeline_mode = #tpu.pipeline_mode<synchronous>, transform_indices = @transform_1, window_bounds = array<i64: 128, 128>}, {pipeline_mode = #tpu.pipeline_mode<synchronous>, transform_indices = @transform_2, window_bounds = array<i64: 1, 128>}, {pipeline_mode = #tpu.pipeline_mode<synchronous>, transform_indices = @transform_3, window_bounds = array<i64: 64, 128>}, {transform_indices = @transform_4, window_bounds = array<i64: 1, 1, 64>}, {pipeline_mode = #tpu.pipeline_mode<synchronous>, transform_indices = @transform_5, window_bounds = array<i64: 1, 1, 128>}, {pipeline_mode = #tpu.pipeline_mode<synchronous>, transform_indices = @transform_6, window_bounds = array<i64: 1, 1, 128>}, {pipeline_mode = #tpu.pipeline_mode<synchronous>, transform_indices = @transform_7, window_bounds = array<i64: 1, 128, 384>}, {pipeline_mode = #tpu.pipeline_mode<synchronous>, transform_indices = @transform_8, window_bounds = array<i64: 1, 1, 384>}, {pipeline_mode = #tpu.pipeline_mode<synchronous>, transform_indices = @transform_9, window_bounds = array<i64: 1, 128, 128>}, {pipeline_mode = #tpu.pipeline_mode<synchronous>, transform_indices = @transform_10, window_bounds = array<i64: 1, 1, 128>}, {pipeline_mode = #tpu.pipeline_mode<synchronous>, transform_indices = @transform_11, window_bounds = array<i64: 1, 1, 128>}, {pipeline_mode = #tpu.pipeline_mode<synchronous>, transform_indices = @transform_12, window_bounds = array<i64: 1, 1, 128>}, {pipeline_mode = #tpu.pipeline_mode<synchronous>, transform_indices = @transform_13, window_bounds = array<i64: 1, 128, 256>}, {pipeline_mode = #tpu.pipeline_mode<synchronous>, transform_indices = @transform_14, window_bounds = array<i64: 1, 1, 256>}, {pipeline_mode = #tpu.pipeline_mode<synchronous>, transform_indices = @transform_15, window_bounds = array<i64: 1, 256, 128>}, {pipeline_mode = #tpu.pipeline_mode<synchronous>, transform_indices = @transform_16, window_bounds = array<i64: 1, 1, 128>}, {pipeline_mode = #tpu.pipeline_mode<synchronous>, transform_indices = @transform_17, window_bounds = array<i64: 16, 64>}, {transform_indices = @transform_18, window_bounds = array<i64: 1, 16, 128>}]} {
    %c0 = arith.constant 0 : index
    %c0_0 = arith.constant 0 : index
    %c0_1 = arith.constant 0 : index
    %0 = vector.load %arg1[%c0, %c0_0, %c0_1] : memref<1x64x128xf32, #tpu.memory_space<vmem>>, vector<1x64x128xf32>
    %1 = vector.shape_cast %0 : vector<1x64x128xf32> to vector<64x128xf32>
    %2 = arith.truncf %1 : vector<64x128xf32> to vector<64x128xbf16>
    %c0_2 = arith.constant 0 : index
    %c0_3 = arith.constant 0 : index
    %3 = vector.load %arg2[%c0_2, %c0_3] : memref<128x128xbf16, #tpu.memory_space<vmem>>, vector<128x128xbf16>
    %cst = arith.constant dense<0.000000e+00> : vector<64x128xf32>
    %4 = tpu.matmul %2, %3, %cst {dimension_numbers = #tpu.dot_dimension_numbers<[1], [0], [0], [1], [0, 0, 1, 1], [], []>} : vector<64x128xbf16>, vector<128x128xbf16>, vector<64x128xf32> -> vector<64x128xf32>
    %c0_4 = arith.constant 0 : index
    %c0_5 = arith.constant 0 : index
    %5 = vector.load %arg3[%c0_4, %c0_5] : memref<1x128xf32, #tpu.memory_space<vmem>>, vector<1x128xf32>
    %6 = vector.broadcast %5 : vector<1x128xf32> to vector<64x128xf32>
    %7 = arith.addf %4, %6 : vector<64x128xf32>
    %c0_6 = arith.constant 0 : index
    %c0_7 = arith.constant 0 : index
    %8 = vector.load %arg4[%c0_6, %c0_7] : memref<64x128xf32, #tpu.memory_space<vmem>>, vector<64x128xf32>
    %9 = arith.addf %7, %8 : vector<64x128xf32>
    %c0_8 = arith.constant 0 : index
    %c0_9 = arith.constant 0 : index
    %c0_10 = arith.constant 0 : index
    %10 = vector.load %arg5[%c0_8, %c0_9, %c0_10] : memref<1x1x64xf32, #tpu.memory_space<vmem>>, vector<1x1x64xf32>
    %11 = vector.shape_cast %10 : vector<1x1x64xf32> to vector<1x64xf32>
    %c0_11 = arith.constant 0 : index
    %c0_12 = arith.constant 0 : index
    %c0_13 = arith.constant 0 : index
    %12 = vector.load %arg6[%c0_11, %c0_12, %c0_13] : memref<1x1x128xf32, #tpu.memory_space<vmem>>, vector<1x1x128xf32>
    %13 = vector.shape_cast %12 : vector<1x1x128xf32> to vector<1x128xf32>
    %c0_14 = arith.constant 0 : index
    %c0_15 = arith.constant 0 : index
    %c0_16 = arith.constant 0 : index
    %14 = vector.load %arg7[%c0_14, %c0_15, %c0_16] : memref<1x1x128xf32, #tpu.memory_space<vmem>>, vector<1x1x128xf32>
    %15 = vector.shape_cast %14 : vector<1x1x128xf32> to vector<1x128xf32>
    %cst_17 = arith.constant dense<0.000000e+00> : vector<64xf32>
    %16 = vector.multi_reduction <add>, %9, %cst_17 [1] : vector<64x128xf32> to vector<64xf32>
    %17 = vector.shape_cast %16 : vector<64xf32> to vector<64x1xf32>
    %cst_18 = arith.constant 1.280000e+02 : f32
    %18 = vector.broadcast %cst_18 : f32 to vector<64x1xf32>
    %19 = arith.divf %17, %18 : vector<64x1xf32>
    %20 = vector.broadcast %19 : vector<64x1xf32> to vector<64x128xf32>
    %21 = arith.subf %9, %20 : vector<64x128xf32>
    %22 = arith.mulf %21, %21 : vector<64x128xf32>
    %cst_19 = arith.constant dense<0.000000e+00> : vector<64xf32>
    %23 = vector.multi_reduction <add>, %22, %cst_19 [1] : vector<64x128xf32> to vector<64xf32>
    %24 = vector.shape_cast %23 : vector<64xf32> to vector<64x1xf32>
    %cst_20 = arith.constant 1.280000e+02 : f32
    %25 = vector.broadcast %cst_20 : f32 to vector<64x1xf32>
    %26 = arith.divf %24, %25 : vector<64x1xf32>
    %27 = vector.broadcast %19 : vector<64x1xf32> to vector<64x128xf32>
    %28 = arith.subf %9, %27 : vector<64x128xf32>
    %cst_21 = arith.constant 9.99999997E-7 : f32
    %29 = vector.broadcast %cst_21 : f32 to vector<64x1xf32>
    %30 = arith.addf %26, %29 : vector<64x1xf32>
    %31 = math.rsqrt %30 : vector<64x1xf32>
    %32 = vector.broadcast %31 : vector<64x1xf32> to vector<64x128xf32>
    %33 = arith.mulf %28, %32 : vector<64x128xf32>
    %34 = vector.broadcast %13 : vector<1x128xf32> to vector<64x128xf32>
    %35 = arith.mulf %33, %34 : vector<64x128xf32>
    %36 = vector.broadcast %15 : vector<1x128xf32> to vector<64x128xf32>
    %37 = arith.addf %35, %36 : vector<64x128xf32>
    %38 = arith.truncf %37 : vector<64x128xf32> to vector<64x128xbf16>
    %c0_22 = arith.constant 0 : index
    %c0_23 = arith.constant 0 : index
    %c0_24 = arith.constant 0 : index
    %39 = vector.load %arg8[%c0_22, %c0_23, %c0_24] : memref<1x128x384xbf16, #tpu.memory_space<vmem>>, vector<1x128x384xbf16>
    %40 = vector.shape_cast %39 : vector<1x128x384xbf16> to vector<128x384xbf16>
    %cst_25 = arith.constant dense<0.000000e+00> : vector<64x384xf32>
    %41 = tpu.matmul %38, %40, %cst_25 {dimension_numbers = #tpu.dot_dimension_numbers<[1], [0], [0], [1], [0, 0, 1, 1], [], []>} : vector<64x128xbf16>, vector<128x384xbf16>, vector<64x384xf32> -> vector<64x384xf32>
    %c0_26 = arith.constant 0 : index
    %c0_27 = arith.constant 0 : index
    %c0_28 = arith.constant 0 : index
    %42 = vector.load %arg9[%c0_26, %c0_27, %c0_28] : memref<1x1x384xf32, #tpu.memory_space<vmem>>, vector<1x1x384xf32>
    %43 = vector.shape_cast %42 : vector<1x1x384xf32> to vector<1x384xf32>
    %44 = vector.broadcast %43 : vector<1x384xf32> to vector<64x384xf32>
    %45 = arith.addf %41, %44 : vector<64x384xf32>
    %46 = vector.extract_strided_slice %45 {offsets = [0, 0], sizes = [64, 64], strides = [1, 1]} : vector<64x384xf32> to vector<64x64xf32>
    %47 = arith.truncf %46 : vector<64x64xf32> to vector<64x64xbf16>
    %48 = vector.extract_strided_slice %45 {offsets = [0, 128], sizes = [64, 64], strides = [1, 1]} : vector<64x384xf32> to vector<64x64xf32>
    %49 = arith.truncf %48 : vector<64x64xf32> to vector<64x64xbf16>
    %50 = vector.extract_strided_slice %45 {offsets = [0, 256], sizes = [64, 64], strides = [1, 1]} : vector<64x384xf32> to vector<64x64xf32>
    %51 = arith.truncf %50 : vector<64x64xf32> to vector<64x64xbf16>
    %cst_29 = arith.constant dense<0.000000e+00> : vector<64x64xf32>
    %52 = tpu.matmul %47, %49, %cst_29 {dimension_numbers = #tpu.dot_dimension_numbers<[1], [1], [0], [0], [0, 0, 1, 0], [], []>} : vector<64x64xbf16>, vector<64x64xbf16>, vector<64x64xf32> -> vector<64x64xf32>
    %cst_30 = arith.constant 1.250000e-01 : f32
    %53 = vector.broadcast %cst_30 : f32 to vector<64x64xf32>
    %54 = arith.mulf %52, %53 : vector<64x64xf32>
    %55 = vector.broadcast %11 : vector<1x64xf32> to vector<64x64xf32>
    %56 = arith.addf %54, %55 : vector<64x64xf32>
    %cst_31 = arith.constant dense<0xFF800000> : vector<64xf32>
    %57 = vector.multi_reduction <maximumf>, %56, %cst_31 [1] : vector<64x64xf32> to vector<64xf32>
    %58 = vector.shape_cast %57 : vector<64xf32> to vector<64x1xf32>
    %59 = vector.broadcast %58 : vector<64x1xf32> to vector<64x64xf32>
    %60 = arith.subf %56, %59 : vector<64x64xf32>
    %61 = math.exp %60 : vector<64x64xf32>
    %cst_32 = arith.constant dense<0.000000e+00> : vector<64xf32>
    %62 = vector.multi_reduction <add>, %61, %cst_32 [1] : vector<64x64xf32> to vector<64xf32>
    %63 = vector.shape_cast %62 : vector<64xf32> to vector<64x1xf32>
    %64 = tpu.reciprocal %63 {approx = true} : vector<64x1xf32> -> vector<64x1xf32>
    %65 = vector.broadcast %64 : vector<64x1xf32> to vector<64x64xf32>
    %66 = arith.mulf %61, %65 : vector<64x64xf32>
    %67 = arith.truncf %66 : vector<64x64xf32> to vector<64x64xbf16>
    %cst_33 = arith.constant dense<0.000000e+00> : vector<64x64xf32>
    %68 = tpu.matmul %67, %51, %cst_33 {dimension_numbers = #tpu.dot_dimension_numbers<[1], [0], [0], [1], [0, 0, 1, 1], [], []>} : vector<64x64xbf16>, vector<64x64xbf16>, vector<64x64xf32> -> vector<64x64xf32>
    %69 = vector.extract_strided_slice %45 {offsets = [0, 64], sizes = [64, 64], strides = [1, 1]} : vector<64x384xf32> to vector<64x64xf32>
    %70 = arith.truncf %69 : vector<64x64xf32> to vector<64x64xbf16>
    %71 = vector.extract_strided_slice %45 {offsets = [0, 192], sizes = [64, 64], strides = [1, 1]} : vector<64x384xf32> to vector<64x64xf32>
    %72 = arith.truncf %71 : vector<64x64xf32> to vector<64x64xbf16>
    %73 = vector.extract_strided_slice %45 {offsets = [0, 320], sizes = [64, 64], strides = [1, 1]} : vector<64x384xf32> to vector<64x64xf32>
    %74 = arith.truncf %73 : vector<64x64xf32> to vector<64x64xbf16>
    %cst_34 = arith.constant dense<0.000000e+00> : vector<64x64xf32>
    %75 = tpu.matmul %70, %72, %cst_34 {dimension_numbers = #tpu.dot_dimension_numbers<[1], [1], [0], [0], [0, 0, 1, 0], [], []>} : vector<64x64xbf16>, vector<64x64xbf16>, vector<64x64xf32> -> vector<64x64xf32>
    %cst_35 = arith.constant 1.250000e-01 : f32
    %76 = vector.broadcast %cst_35 : f32 to vector<64x64xf32>
    %77 = arith.mulf %75, %76 : vector<64x64xf32>
    %78 = vector.broadcast %11 : vector<1x64xf32> to vector<64x64xf32>
    %79 = arith.addf %77, %78 : vector<64x64xf32>
    %cst_36 = arith.constant dense<0xFF800000> : vector<64xf32>
    %80 = vector.multi_reduction <maximumf>, %79, %cst_36 [1] : vector<64x64xf32> to vector<64xf32>
    %81 = vector.shape_cast %80 : vector<64xf32> to vector<64x1xf32>
    %82 = vector.broadcast %81 : vector<64x1xf32> to vector<64x64xf32>
    %83 = arith.subf %79, %82 : vector<64x64xf32>
    %84 = math.exp %83 : vector<64x64xf32>
    %cst_37 = arith.constant dense<0.000000e+00> : vector<64xf32>
    %85 = vector.multi_reduction <add>, %84, %cst_37 [1] : vector<64x64xf32> to vector<64xf32>
    %86 = vector.shape_cast %85 : vector<64xf32> to vector<64x1xf32>
    %87 = tpu.reciprocal %86 {approx = true} : vector<64x1xf32> -> vector<64x1xf32>
    %88 = vector.broadcast %87 : vector<64x1xf32> to vector<64x64xf32>
    %89 = arith.mulf %84, %88 : vector<64x64xf32>
    %90 = arith.truncf %89 : vector<64x64xf32> to vector<64x64xbf16>
    %cst_38 = arith.constant dense<0.000000e+00> : vector<64x64xf32>
    %91 = tpu.matmul %90, %74, %cst_38 {dimension_numbers = #tpu.dot_dimension_numbers<[1], [0], [0], [1], [0, 0, 1, 1], [], []>} : vector<64x64xbf16>, vector<64x64xbf16>, vector<64x64xf32> -> vector<64x64xf32>
    %92 = tpu.concatenate %68, %91 in 1 : vector<64x64xf32>, vector<64x64xf32> -> vector<64x128xf32>
    %93 = arith.truncf %92 : vector<64x128xf32> to vector<64x128xbf16>
    %c0_39 = arith.constant 0 : index
    %c0_40 = arith.constant 0 : index
    %c0_41 = arith.constant 0 : index
    %94 = vector.load %arg10[%c0_39, %c0_40, %c0_41] : memref<1x128x128xbf16, #tpu.memory_space<vmem>>, vector<1x128x128xbf16>
    %95 = vector.shape_cast %94 : vector<1x128x128xbf16> to vector<128x128xbf16>
    %cst_42 = arith.constant dense<0.000000e+00> : vector<64x128xf32>
    %96 = tpu.matmul %93, %95, %cst_42 {dimension_numbers = #tpu.dot_dimension_numbers<[1], [0], [0], [1], [0, 0, 1, 1], [], []>} : vector<64x128xbf16>, vector<128x128xbf16>, vector<64x128xf32> -> vector<64x128xf32>
    %c0_43 = arith.constant 0 : index
    %c0_44 = arith.constant 0 : index
    %c0_45 = arith.constant 0 : index
    %97 = vector.load %arg11[%c0_43, %c0_44, %c0_45] : memref<1x1x128xf32, #tpu.memory_space<vmem>>, vector<1x1x128xf32>
    %98 = vector.shape_cast %97 : vector<1x1x128xf32> to vector<1x128xf32>
    %99 = vector.broadcast %98 : vector<1x128xf32> to vector<64x128xf32>
    %100 = arith.addf %96, %99 : vector<64x128xf32>
    %101 = arith.addf %9, %100 : vector<64x128xf32>
    %c0_46 = arith.constant 0 : index
    %c0_47 = arith.constant 0 : index
    %c0_48 = arith.constant 0 : index
    %102 = vector.load %arg12[%c0_46, %c0_47, %c0_48] : memref<1x1x128xf32, #tpu.memory_space<vmem>>, vector<1x1x128xf32>
    %103 = vector.shape_cast %102 : vector<1x1x128xf32> to vector<1x128xf32>
    %c0_49 = arith.constant 0 : index
    %c0_50 = arith.constant 0 : index
    %c0_51 = arith.constant 0 : index
    %104 = vector.load %arg13[%c0_49, %c0_50, %c0_51] : memref<1x1x128xf32, #tpu.memory_space<vmem>>, vector<1x1x128xf32>
    %105 = vector.shape_cast %104 : vector<1x1x128xf32> to vector<1x128xf32>
    %cst_52 = arith.constant dense<0.000000e+00> : vector<64xf32>
    %106 = vector.multi_reduction <add>, %101, %cst_52 [1] : vector<64x128xf32> to vector<64xf32>
    %107 = vector.shape_cast %106 : vector<64xf32> to vector<64x1xf32>
    %cst_53 = arith.constant 1.280000e+02 : f32
    %108 = vector.broadcast %cst_53 : f32 to vector<64x1xf32>
    %109 = arith.divf %107, %108 : vector<64x1xf32>
    %110 = vector.broadcast %109 : vector<64x1xf32> to vector<64x128xf32>
    %111 = arith.subf %101, %110 : vector<64x128xf32>
    %112 = arith.mulf %111, %111 : vector<64x128xf32>
    %cst_54 = arith.constant dense<0.000000e+00> : vector<64xf32>
    %113 = vector.multi_reduction <add>, %112, %cst_54 [1] : vector<64x128xf32> to vector<64xf32>
    %114 = vector.shape_cast %113 : vector<64xf32> to vector<64x1xf32>
    %cst_55 = arith.constant 1.280000e+02 : f32
    %115 = vector.broadcast %cst_55 : f32 to vector<64x1xf32>
    %116 = arith.divf %114, %115 : vector<64x1xf32>
    %117 = vector.broadcast %109 : vector<64x1xf32> to vector<64x128xf32>
    %118 = arith.subf %101, %117 : vector<64x128xf32>
    %cst_56 = arith.constant 9.99999997E-7 : f32
    %119 = vector.broadcast %cst_56 : f32 to vector<64x1xf32>
    %120 = arith.addf %116, %119 : vector<64x1xf32>
    %121 = math.rsqrt %120 : vector<64x1xf32>
    %122 = vector.broadcast %121 : vector<64x1xf32> to vector<64x128xf32>
    %123 = arith.mulf %118, %122 : vector<64x128xf32>
    %124 = vector.broadcast %103 : vector<1x128xf32> to vector<64x128xf32>
    %125 = arith.mulf %123, %124 : vector<64x128xf32>
    %126 = vector.broadcast %105 : vector<1x128xf32> to vector<64x128xf32>
    %127 = arith.addf %125, %126 : vector<64x128xf32>
    %128 = arith.truncf %127 : vector<64x128xf32> to vector<64x128xbf16>
    %c0_57 = arith.constant 0 : index
    %c0_58 = arith.constant 0 : index
    %c0_59 = arith.constant 0 : index
    %129 = vector.load %arg14[%c0_57, %c0_58, %c0_59] : memref<1x128x256xbf16, #tpu.memory_space<vmem>>, vector<1x128x256xbf16>
    %130 = vector.shape_cast %129 : vector<1x128x256xbf16> to vector<128x256xbf16>
    %cst_60 = arith.constant dense<0.000000e+00> : vector<64x256xf32>
    %131 = tpu.matmul %128, %130, %cst_60 {dimension_numbers = #tpu.dot_dimension_numbers<[1], [0], [0], [1], [0, 0, 1, 1], [], []>} : vector<64x128xbf16>, vector<128x256xbf16>, vector<64x256xf32> -> vector<64x256xf32>
    %c0_61 = arith.constant 0 : index
    %c0_62 = arith.constant 0 : index
    %c0_63 = arith.constant 0 : index
    %132 = vector.load %arg15[%c0_61, %c0_62, %c0_63] : memref<1x1x256xf32, #tpu.memory_space<vmem>>, vector<1x1x256xf32>
    %133 = vector.shape_cast %132 : vector<1x1x256xf32> to vector<1x256xf32>
    %134 = vector.broadcast %133 : vector<1x256xf32> to vector<64x256xf32>
    %135 = arith.addf %131, %134 : vector<64x256xf32>
    %cst_64 = arith.constant 5.000000e-01 : f32
    %136 = vector.broadcast %cst_64 : f32 to vector<64x256xf32>
    %137 = arith.mulf %136, %135 : vector<64x256xf32>
    %cst_65 = arith.constant 0.707106769 : f32
    %138 = vector.broadcast %cst_65 : f32 to vector<64x256xf32>
    %139 = arith.mulf %135, %138 : vector<64x256xf32>
    %140 = math.erf %139 : vector<64x256xf32>
    %cst_66 = arith.constant 1.000000e+00 : f32
    %141 = vector.broadcast %cst_66 : f32 to vector<64x256xf32>
    %142 = arith.addf %141, %140 : vector<64x256xf32>
    %143 = arith.mulf %137, %142 : vector<64x256xf32>
    %144 = arith.truncf %143 : vector<64x256xf32> to vector<64x256xbf16>
    %c0_67 = arith.constant 0 : index
    %c0_68 = arith.constant 0 : index
    %c0_69 = arith.constant 0 : index
    %145 = vector.load %arg16[%c0_67, %c0_68, %c0_69] : memref<1x256x128xbf16, #tpu.memory_space<vmem>>, vector<1x256x128xbf16>
    %146 = vector.shape_cast %145 : vector<1x256x128xbf16> to vector<256x128xbf16>
    %cst_70 = arith.constant dense<0.000000e+00> : vector<64x128xf32>
    %147 = tpu.matmul %144, %146, %cst_70 {dimension_numbers = #tpu.dot_dimension_numbers<[1], [0], [0], [1], [0, 0, 1, 1], [], []>} : vector<64x256xbf16>, vector<256x128xbf16>, vector<64x128xf32> -> vector<64x128xf32>
    %c0_71 = arith.constant 0 : index
    %c0_72 = arith.constant 0 : index
    %c0_73 = arith.constant 0 : index
    %148 = vector.load %arg17[%c0_71, %c0_72, %c0_73] : memref<1x1x128xf32, #tpu.memory_space<vmem>>, vector<1x1x128xf32>
    %149 = vector.shape_cast %148 : vector<1x1x128xf32> to vector<1x128xf32>
    %150 = vector.broadcast %149 : vector<1x128xf32> to vector<64x128xf32>
    %151 = arith.addf %147, %150 : vector<64x128xf32>
    %152 = arith.addf %101, %151 : vector<64x128xf32>
    %c0_74 = arith.constant 0 : index
    %c0_75 = arith.constant 0 : index
    %153 = vector.load %arg18[%c0_74, %c0_75] : memref<16x64xf32, #tpu.memory_space<vmem>>, vector<16x64xf32>
    %cst_76 = arith.constant dense<0.000000e+00> : vector<16x128xf32>
    %154 = tpu.matmul %153, %152, %cst_76 {dimension_numbers = #tpu.dot_dimension_numbers<[1], [0], [0], [1], [0, 0, 1, 1], [], []>} : vector<16x64xf32>, vector<64x128xf32>, vector<16x128xf32> -> vector<16x128xf32>
    %c0_77 = arith.constant 0 : index
    %c0_78 = arith.constant 0 : index
    %c0_79 = arith.constant 0 : index
    %155 = vector.load %arg19[%c0_77, %c0_78, %c0_79] : memref<1x16x128xf32, #tpu.memory_space<vmem>>, vector<1x16x128xf32>
    %156 = vector.shape_cast %155 : vector<1x16x128xf32> to vector<16x128xf32>
    %157 = vector.shape_cast %154 : vector<16x128xf32> to vector<1x16x128xf32>
    tpu.vector_store %arg19[%c0_77, %c0_78, %c0_79], %157 {strides = array<i32>} : memref<1x16x128xf32, #tpu.memory_space<vmem>>, vector<1x16x128xf32>,
    return
  }
  func.func @transform_0(%arg0: i32) -> (i32, i32, i32) {
    %c0_i32 = arith.constant 0 : i32
    %c0_i32_0 = arith.constant 0 : i32
    %c0_i32_1 = arith.constant 0 : i32
    return %arg0, %c0_i32, %c0_i32_0 : i32, i32, i32
  }
  func.func @transform_1(%arg0: i32) -> (i32, i32) {
    %c0_i32 = arith.constant 0 : i32
    %c0_i32_0 = arith.constant 0 : i32
    %c0_i32_1 = arith.constant 0 : i32
    return %c0_i32, %c0_i32_0 : i32, i32
  }
  func.func @transform_2(%arg0: i32) -> (i32, i32) {
    %c0_i32 = arith.constant 0 : i32
    %c0_i32_0 = arith.constant 0 : i32
    %c0_i32_1 = arith.constant 0 : i32
    return %c0_i32, %c0_i32_0 : i32, i32
  }
  func.func @transform_3(%arg0: i32) -> (i32, i32) {
    %c0_i32 = arith.constant 0 : i32
    %c0_i32_0 = arith.constant 0 : i32
    %c0_i32_1 = arith.constant 0 : i32
    return %c0_i32, %c0_i32_0 : i32, i32
  }
  func.func @transform_4(%arg0: i32) -> (i32, i32, i32) {
    %c0_i32 = arith.constant 0 : i32
    %c0_i32_0 = arith.constant 0 : i32
    %c0_i32_1 = arith.constant 0 : i32
    return %arg0, %c0_i32, %c0_i32_0 : i32, i32, i32
  }
  func.func @transform_5(%arg0: i32) -> (i32, i32, i32) {
    %c0_i32 = arith.constant 0 : i32
    %c0_i32_0 = arith.constant 0 : i32
    %c0_i32_1 = arith.constant 0 : i32
    %c0_i32_2 = arith.constant 0 : i32
    return %c0_i32, %c0_i32_0, %c0_i32_1 : i32, i32, i32
  }
  func.func @transform_6(%arg0: i32) -> (i32, i32, i32) {
    %c0_i32 = arith.constant 0 : i32
    %c0_i32_0 = arith.constant 0 : i32
    %c0_i32_1 = arith.constant 0 : i32
    %c0_i32_2 = arith.constant 0 : i32
    return %c0_i32, %c0_i32_0, %c0_i32_1 : i32, i32, i32
  }
  func.func @transform_7(%arg0: i32) -> (i32, i32, i32) {
    %c0_i32 = arith.constant 0 : i32
    %c0_i32_0 = arith.constant 0 : i32
    %c0_i32_1 = arith.constant 0 : i32
    %c0_i32_2 = arith.constant 0 : i32
    return %c0_i32, %c0_i32_0, %c0_i32_1 : i32, i32, i32
  }
  func.func @transform_8(%arg0: i32) -> (i32, i32, i32) {
    %c0_i32 = arith.constant 0 : i32
    %c0_i32_0 = arith.constant 0 : i32
    %c0_i32_1 = arith.constant 0 : i32
    %c0_i32_2 = arith.constant 0 : i32
    return %c0_i32, %c0_i32_0, %c0_i32_1 : i32, i32, i32
  }
  func.func @transform_9(%arg0: i32) -> (i32, i32, i32) {
    %c0_i32 = arith.constant 0 : i32
    %c0_i32_0 = arith.constant 0 : i32
    %c0_i32_1 = arith.constant 0 : i32
    %c0_i32_2 = arith.constant 0 : i32
    return %c0_i32, %c0_i32_0, %c0_i32_1 : i32, i32, i32
  }
  func.func @transform_10(%arg0: i32) -> (i32, i32, i32) {
    %c0_i32 = arith.constant 0 : i32
    %c0_i32_0 = arith.constant 0 : i32
    %c0_i32_1 = arith.constant 0 : i32
    %c0_i32_2 = arith.constant 0 : i32
    return %c0_i32, %c0_i32_0, %c0_i32_1 : i32, i32, i32
  }
  func.func @transform_11(%arg0: i32) -> (i32, i32, i32) {
    %c0_i32 = arith.constant 0 : i32
    %c0_i32_0 = arith.constant 0 : i32
    %c0_i32_1 = arith.constant 0 : i32
    %c0_i32_2 = arith.constant 0 : i32
    return %c0_i32, %c0_i32_0, %c0_i32_1 : i32, i32, i32
  }
  func.func @transform_12(%arg0: i32) -> (i32, i32, i32) {
    %c0_i32 = arith.constant 0 : i32
    %c0_i32_0 = arith.constant 0 : i32
    %c0_i32_1 = arith.constant 0 : i32
    %c0_i32_2 = arith.constant 0 : i32
    return %c0_i32, %c0_i32_0, %c0_i32_1 : i32, i32, i32
  }
  func.func @transform_13(%arg0: i32) -> (i32, i32, i32) {
    %c0_i32 = arith.constant 0 : i32
    %c0_i32_0 = arith.constant 0 : i32
    %c0_i32_1 = arith.constant 0 : i32
    %c0_i32_2 = arith.constant 0 : i32
    return %c0_i32, %c0_i32_0, %c0_i32_1 : i32, i32, i32
  }
  func.func @transform_14(%arg0: i32) -> (i32, i32, i32) {
    %c0_i32 = arith.constant 0 : i32
    %c0_i32_0 = arith.constant 0 : i32
    %c0_i32_1 = arith.constant 0 : i32
    %c0_i32_2 = arith.constant 0 : i32
    return %c0_i32, %c0_i32_0, %c0_i32_1 : i32, i32, i32
  }
  func.func @transform_15(%arg0: i32) -> (i32, i32, i32) {
    %c0_i32 = arith.constant 0 : i32
    %c0_i32_0 = arith.constant 0 : i32
    %c0_i32_1 = arith.constant 0 : i32
    %c0_i32_2 = arith.constant 0 : i32
    return %c0_i32, %c0_i32_0, %c0_i32_1 : i32, i32, i32
  }
  func.func @transform_16(%arg0: i32) -> (i32, i32, i32) {
    %c0_i32 = arith.constant 0 : i32
    %c0_i32_0 = arith.constant 0 : i32
    %c0_i32_1 = arith.constant 0 : i32
    %c0_i32_2 = arith.constant 0 : i32
    return %c0_i32, %c0_i32_0, %c0_i32_1 : i32, i32, i32
  }
  func.func @transform_17(%arg0: i32) -> (i32, i32) {
    %c0_i32 = arith.constant 0 : i32
    %c0_i32_0 = arith.constant 0 : i32
    %c0_i32_1 = arith.constant 0 : i32
    return %c0_i32, %c0_i32_0 : i32, i32
  }
  func.func @transform_18(%arg0: i32) -> (i32, i32, i32) {
    %c0_i32 = arith.constant 0 : i32
    %c0_i32_0 = arith.constant 0 : i32
    %c0_i32_1 = arith.constant 0 : i32
    return %arg0, %c0_i32, %c0_i32_0 : i32, i32, i32
  }
}

</mosaic_0001>

<bundles_post_ra>
// kernel: _compute_crop_features.1
= control target key start
LH: loop header
LB: loop body
LE: loop exit
PB: predicated region body
PF: predicated region fallthrough
CT: control target
= control target key end

     0   :  { %s4407_s0 = inlined_call_operand.vmem [shape: f32[6,64,128], index: 0, kind: input, shape index: {}]   ;;  %s4408_s1 = inlined_call_operand.vmem [shape: bf16[128,128], index: 1, kind: input, shape index: {}]   ;;  %s4409_s2 = inlined_call_operand.vmem [shape: f32[1,128], index: 2, kind: input, shape index: {}]   ;;  %s4410_s3 = inlined_call_operand.vmem [shape: f32[64,128], index: 3, kind: input, shape index: {}]   ;;  %s4411_s4 = inlined_call_operand.vmem [shape: f32[6,1,64], index: 4, kind: input, shape index: {}]   ;;  %s4412_s5 = inlined_call_operand.vmem [shape: f32[1,1,128], index: 5, kind: input, shape index: {}]   ;;  %s4413_s6 = inlined_call_operand.vmem [shape: f32[1,1,128], index: 6, kind: input, shape index: {}]   ;;  %s4414_s7 = inlined_call_operand.vmem [shape: bf16[1,128,384], index: 7, kind: input, shape index: {}]   ;;  %s4415_s8 = inlined_call_operand.vmem [shape: f32[1,1,384], index: 8, kind: input, shape index: {}]   ;;  %s4416_s9 = inlined_call_operand.vmem [shape: bf16[1,128,128], index: 9, kind: input, shape index: {}]   ;;  %s4417_s10 = inlined_call_operand.vmem [shape: f32[1,1,128], index: 10, kind: input, shape index: {}]   ;;  %s4418_s11 = inlined_call_operand.vmem [shape: f32[1,1,128], index: 11, kind: input, shape index: {}]   ;;  %s4419_s12 = inlined_call_operand.vmem [shape: f32[1,1,128], index: 12, kind: input, shape index: {}]   ;;  %s4420_s13 = inlined_call_operand.vmem [shape: bf16[1,128,256], index: 13, kind: input, shape index: {}]   ;;  %s4421_s14 = inlined_call_operand.vmem [shape: f32[1,1,256], index: 14, kind: input, shape index: {}]   ;;  %s4422_s15 = inlined_call_operand.vmem [shape: bf16[1,256,128], index: 15, kind: input, shape index: {}]   ;;  %s4423_s16 = inlined_call_operand.vmem [shape: f32[1,1,128], index: 16, kind: input, shape index: {}]   ;;  %s4424_s17 = inlined_call_operand.vmem [shape: f32[16,64], index: 17, kind: input, shape index: {}]   ;;  %s4425_s18 = inlined_call_operand.hbm [shape: f32[6,16,128], index: 18, kind: output, shape index: {}]  }
   0x1   :  { %4434 = sst [smem:[#allocation11_spill]] %s4407_s0 }
   0x2   :  { %4435 = sst [smem:[#allocation12_spill]] %s4408_s1 }
   0x3   :  { %4436 = sst [smem:[#allocation13_spill]] %s4409_s2 }
   0x4   :  { %4437 = sst [smem:[#allocation14_spill]] %s4410_s3 }
   0x5   :  { %4438 = sst [smem:[#allocation15_spill]] %s4425_s18 }
   0x6   :  { %23 = vsyncpa [#allocation3], 0 }
   0x7   :  { %25 = vsyncpa [#allocation3 + $0x1], 0  ;;  %s3590_s27 = smov 0   ;;  %s3592_s28 = smov 0  }
   0x8   :  { %s3594_s29 = smov 0   ;;  %s3596_s30 = smov 0  }
   0x9 LB: > { %4439 = sst [smem:[#allocation5_spill]] %s3476_s27  ;;  %s3611_s0 = sadd.s32 4294967295, %s3488_s30   ;;  %s3488_s30 = sphi %s3596_s30, %s4456_s30   ;;  %s3484_s29 = sphi %s3594_s29, %s4458_s29   ;;  %s3480_s28 = sphi %s3592_s28, %s4460_s28   ;;  %s3476_s27 = sphi %s3590_s27, %s4459_s27  }
   0xa   : > { %4440 = sst [smem:[#allocation6_spill]] %s3484_s29  ;;  %s2756_s19 = sadd.s32 4294967294, %s3488_s30  }
   0xb   : > { %4441 = sst [smem:[#allocation7_spill]] %s3488_s30  ;;  %s3615_s1 = sadd.s32 1, %s3488_s30  }
   0xc   : > { %4442 = sst [smem:[#allocation8_spill]] %s3615_s1  ;;  %s426_s20 = sadd.s32 1, %s3484_s29 }
   0xd   : > { %s423_s21 = ssub.s32 %s3488_s30, %s3615_s1  ;;  %p436_p0 = scmp.ne.s32.totalorder %s3484_s29, %s3480_s28 }
   0xe   : > { %p424_p1 = scmp.eq.s32.totalorder %s423_s21, 0  ;;  %p437_p2 = scmp.eq.s32.totalorder %s3611_s0, 5 }
   0xf   : > { %p442_p3 = scmp.ne.s32.totalorder %s3480_s28, %s3476_s27  ;;  %p443_p4 = scmp.eq.s32.totalorder %s2756_s19, 5 }
  0x10   : > { %s3626_s22 = scalar_select %p424_p1, %s3484_s29, %s426_s20  }
  0x11   : > { %p3628_p5 = por %p437_p2, %p436_p0  ;;  %p3632_p6 = por %p443_p4, %p442_p3 }
  0x12   : > { %4443 = sst [smem:[#allocation9_spill]] %s3626_s22  ;;  %p2759_p7 = scmp.ge.s32.totalorder %s3488_s30, 1 }
  0x13   : > { %s4445_s23 = scalar_select %p3632_p6, 1, 0 }
  0x14   : > { %p523_p8 = scmp.lt.s32.totalorder %s3488_s30, 7 }
  0x15   : > { %4446 = sst [smem:[#allocation10_spill]] %s4445_s23 }
  0x16   : > { %p524_p9 = pnand %p2759_p7, %p523_p8 }
  0x17   : > { %s4447_s26 = sld [smem:[#allocation12_spill]] (!%p524_p9)  ;;  %p580_p10 = scmp.lt.s32.totalorder (!%p524_p9), %s3611_s0, 5 }
  0x18   : > { %527 = sbr.rel (%p524_p9) target bundleno = 3478 (0xd96), region = 92  ;;  %s4448_s23 = sld [smem:[#allocation11_spill]] (!%p524_p9) }
  0x19   : > { %s4449_s19 = sld [smem:[#allocation13_spill]] (!%p524_p9) }
  0x1a   : > { %s4450_s3 = sld [smem:[#allocation14_spill]] (!%p524_p9) }
  0x1b   : > { %s4451_s29 = sld [smem:[#allocation15_spill]] (!%p524_p9) }
  0x1d   : > { %v3212_v0 = vld [vmem:[%s4447_s26 + $0x38] sm:$0xff]   ;;  %v3213_v1 = vld [vmem:[%s4447_s26 + $0x30] sm:$0xff]   ;;  %s3646_s21 = scalar_select %p580_p10, %s3611_s0, 5  ;;  %v3214_v2 = vld [vmem:[%s4447_s26 + $0x28] sm:$0xff]   ;;  %vm1204_vm0 = vcmask 523264  }
  0x1e   : > { %2986 = vmatprep.subr.bf16.mxu0 %v3212_v0  ;;  %v3215_v3 = vld [vmem:[%s4447_s26 + $0x20] sm:$0xff]   ;;  %v3216_v7 = vld [vmem:[%s4447_s26 + $0x18] sm:$0xff]   ;;  %v3217_v8 = vld [vmem:[%s4447_s26 + $0x10] sm:$0xff]  }
  0x1f   : > { %2987 = vmatpush3.bf16.msra.mxu0 %v3212_v0  ;;  %s2866_s1 = sshll.u32 %s3646_s21, 6  ;;  %v3218_v9 = vld [vmem:[%s4447_s26 + $0x8] sm:$0xff]   ;;  %v3219_v10 = vld [vmem:[%s4447_s26] sm:$0xff]   ;;  %s587_s30 = scalar_lea.vmem %s4411_s4, %s3646_s21 }
  0x20   : > { %2988 = vmatprep.subr.bf16.mxu0 %v3213_v1  ;;  %s584_s27 = scalar_lea.vmem %s4448_s23, %s2866_s1  ;;  %v2763_v20 = vld [vmem:[%s4449_s19] ss:$0 sm:$0xff]  ;;  %v739_v22 = vld [vmem:[%s4450_s3 + $0x10] sm:$0xff]  ;;  %v740_v29 = vld [vmem:[%s4450_s3 + $0x18] sm:$0xff]  ;;  %s3491_s21 = smov 64  }
  0x21   : > { %v589_v4 = vld [vmem:[%s584_s27] sm:$0xff]  ;;  %v590_v5 = vld [vmem:[%s584_s27 + $0x8] sm:$0xff]  ;;  %v591_v11 = vld [vmem:[%s584_s27 + $0x10] sm:$0xff]  ;;  %s2867_s19 = sshll.u32 %s3611_s0, 8  ;;  %s4452_s22 = smov %s4451_s29 }
  0x22   : > { %v597_v6 = vpack.c.bf16 %v590_v5, %v589_v4  ;;  %v592_v12 = vld [vmem:[%s584_s27 + $0x18] sm:$0xff]  ;;  %v593_v13 = vld [vmem:[%s584_s27 + $0x20] sm:$0xff]  ;;  %v594_v14 = vld [vmem:[%s584_s27 + $0x28] sm:$0xff]  ;;  %s4365_s1 = scalar_lea.hbm %s4451_s29, %s2867_s19  ;;  %s3492_s0 = smov [#allocation2]  }
  0x23   : > { %2989 = vmatpush3.bf16.msra.mxu0 %v3213_v1  ;;  %v598_v15 = vpack.c.bf16 %v592_v12, %v591_v11  ;;  %v599_v16 = vpack.c.bf16 %v594_v14, %v593_v13  ;;  %v595_v17 = vld [vmem:[%s584_s27 + $0x30] sm:$0xff]  ;;  %v596_v18 = vld [vmem:[%s584_s27 + $0x38] sm:$0xff]  ;;  %v737_v25 = vld [vmem:[%s4450_s3] sm:$0xff] }
  0x24   : > { %2990 = vmatprep.subr.bf16.mxu0 %v3214_v2  ;;  %3002 = vmatprep.mubr.bf16.mxu0 %v597_v6  ;;  %v600_v19 = vpack.c.bf16 %v596_v18, %v595_v17  ;;  %v738_v33 = vld [vmem:[%s4450_s3 + $0x8] sm:$0xff]  ;;  %v741_v39 = vld [vmem:[%s4450_s3 + $0x20] sm:$0xff]  ;;  %v743_v42 = vld [vmem:[%s4450_s3 + $0x30] sm:$0xff] }
  0x25   : > { %v742_v46 = vld [vmem:[%s4450_s3 + $0x28] sm:$0xff]  ;;  %v744_v51 = vld [vmem:[%s4450_s3 + $0x38] sm:$0xff] }
  0x26   : > { %v3220_v53 = vld [vmem:[%s4414_s7 + $0xac] ss:$12 sps:$4 sm:$0xff]   ;;  %v3222_v54 = vld [vmem:[%s4414_s7 + $0xa8] ss:$12 sps:$4 sm:$0xff]  }
  0x27   : > { %2991 = vmatpush3.bf16.msra.mxu0 %v3214_v2  ;;  %1054 = vmatprep.subr.bf16.mxu1 %v3220_v53  ;;  %v3251_v53 = vld [vmem:[%s4414_s7 + $0x8] ss:$12 sps:$4 sm:$0xff]  }
  0x28   : > { %2992 = vmatprep.subr.bf16.mxu0 %v3215_v3  ;;  %1055 = vmatpush1.bf16.msra.mxu1 %v3222_v54 }
  0x2b   : > { %2993 = vmatpush3.bf16.msra.mxu0 %v3215_v3 }
  0x2c   : > { %2994 = vmatprep.subr.bf16.mxu0 %v3216_v7 }
  0x2f   : > { %2995 = vmatpush3.bf16.msra.mxu0 %v3216_v7 }
  0x30   : > { %2996 = vmatprep.subr.bf16.mxu0 %v3217_v8 }
  0x33   : > { %2997 = vmatpush3.bf16.msra.mxu0 %v3217_v8 }
  0x34   : > { %2998 = vmatprep.subr.bf16.mxu0 %v3218_v9 }
  0x37   : > { %2999 = vmatpush3.bf16.msra.mxu0 %v3218_v9 }
  0x38   : > { %3000 = vmatprep.subr.bf16.mxu0 %v3219_v10 }
  0x3b   : > { %3001 = vmatpush3.bf16.msra.mxu0 %v3219_v10 }
  0x3e   : > { %3003 = vmatmul.mubr.bf16.vlgmr.msra.gmra.mxu0 %v598_v15 }
  0x3f   : > { %3006 = vmatprep.mubr.bf16.mxu0 %v599_v16 }
  0x46   : > { %3007 = vmatmul.mubr.bf16.gmra.mxu0 %v600_v19 }
  0xfe   : > { %v3004_v21 = vpop.f32.mrf.mxu0 }
  0xff   : > { %v715_v23 = vadd.f32 %v3004_v21, %v2763_v20  ;;  %v3223_v21 = vld [vmem:[%s4414_s7 + $0x94] ss:$12 sps:$4 sm:$0xff]  }
 0x100   : > { %v706_v24 = vpop.f32.mrf.mxu0  ;;  %1056 = vmatprep.subr.bf16.mxu1 %v3223_v21 }
 0x101   : > { %v3679_v26 = vadd.f32 %v739_v22, %v715_v23  ;;  %v707_v27 = vadd.f32 %v2763_v20, %v706_v24  ;;  %v3225_v22 = vld [vmem:[%s4414_s7 + $0xb0] ss:$12 sps:$4 sm:$0xff]  }
 0x102   : > { %v3005_v28 = vpop.f32.mrf.mxu0  ;;  %v3226_v23 = vld [vmem:[%s4414_s7 + $0x90] ss:$12 sps:$4 sm:$0xff]   ;;  %3010 = vmatprep.subr.bf16.mxu0 %v3225_v22 }
 0x103   : > { %v3684_v30 = vadd.f32 %v737_v25, %v707_v27  ;;  %v718_v31 = vadd.f32 %v3005_v28, %v2763_v20  ;;  %760 = vadd.xlane.f32.xlu1 %v3679_v26  ;;  %1057 = vmatpush1.bf16.msra.mxu1 %v3226_v23  ;;  %v3227_v27 = vld [vmem:[%s4414_s7 + $0x7c] ss:$12 sps:$4 sm:$0xff]   ;;  %v3229_v28 = vld [vmem:[%s4414_s7 + $0x98] ss:$12 sps:$4 sm:$0xff]   ;;  %v2772_v23 = vld [vmem:[%s4412_s5] ss:$0 sm:$0xff] }
 0x104   : > { %v709_v32 = vpop.f32.mrf.mxu0  ;;  %3011 = vmatpush3.bf16.msra.mxu0 %v3225_v22  ;;  %1058 = vmatprep.subr.bf16.mxu1 %v3227_v27 }
 0x105   : > { %v3690_v34 = vadd.f32 %v740_v29, %v718_v31  ;;  %v710_v35 = vadd.f32 %v2763_v20, %v709_v32  ;;  %756 = vadd.xlane.f32.xlu0 %v3684_v30  ;;  %v3230_v29 = vld [vmem:[%s4414_s7 + $0x78] ss:$12 sps:$4 sm:$0xff]   ;;  %3012 = vmatprep.subr.bf16.mxu0 %v3229_v28  ;;  %v3233_v32 = vld [vmem:[%s4414_s7 + $0x80] ss:$12 sps:$4 sm:$0xff]  }
 0x106   : > { %v3008_v36 = vpop.f32.mrf.mxu0  ;;  %v3231_v31 = vld [vmem:[%s4414_s7 + $0x64] ss:$12 sps:$4 sm:$0xff]  }
 0x107   : > { %v3693_v37 = vadd.f32 %v738_v33, %v710_v35  ;;  %762 = vadd.xlane.f32.xlu1 %v3690_v34  ;;  %v731_v40 = vadd.f32 %v3008_v36, %v2763_v20  ;;  %1059 = vmatpush1.bf16.msra.mxu1 %v3230_v29  ;;  %v3234_v33 = vld [vmem:[%s4414_s7 + $0x60] ss:$12 sps:$4 sm:$0xff]   ;;  %v3237_v36 = vld [vmem:[%s4414_s7 + $0x68] ss:$12 sps:$4 sm:$0xff]  }
 0x108   : > { %v722_v38 = vpop.f32.mrf.mxu0  ;;  %3013 = vmatpush3.bf16.msra.mxu0 %v3229_v28  ;;  %1060 = vmatprep.subr.bf16.mxu1 %v3231_v31  ;;  %v3235_v35 = vld [vmem:[%s4414_s7 + $0x4c] ss:$12 sps:$4 sm:$0xff]  }
 0x109   : > { %v723_v41 = vadd.f32 %v2763_v20, %v722_v38  ;;  %758 = vadd.xlane.f32.xlu0 %v3693_v37  ;;  %v3708_v47 = vadd.f32 %v743_v42, %v731_v40  ;;  %3014 = vmatprep.subr.bf16.mxu0 %v3233_v32  ;;  %v3238_v38 = vld [vmem:[%s4414_s7 + $0x48] ss:$12 sps:$4 sm:$0xff]   ;;  %v3241_v40 = vld [vmem:[%s4414_s7 + $0x50] ss:$12 sps:$4 sm:$0xff]  }
 0x10a   : > { %v3009_v43 = vpop.f32.mrf.mxu0  ;;  %v3243_v42 = vld [vmem:[%s4414_s7 + $0x1c] ss:$12 sps:$4 sm:$0xff]  }
 0x10b   : > { %v3703_v44 = vadd.f32 %v741_v39, %v723_v41  ;;  %v734_v49 = vadd.f32 %v3009_v43, %v2763_v20  ;;  %1061 = vmatpush1.bf16.msra.mxu1 %v3234_v33  ;;  %v3239_v39 = vld [vmem:[%s4414_s7 + $0x34] ss:$12 sps:$4 sm:$0xff]   ;;  %v3242_v41 = vld [vmem:[%s4414_s7 + $0x30] ss:$12 sps:$4 sm:$0xff]   ;;  %v3245_v43 = vld [vmem:[%s4414_s7 + $0x38] ss:$12 sps:$4 sm:$0xff]  }
 0x10c   : > { %v725_v45 = vpop.f32.mrf.mxu0  ;;  %3015 = vmatpush3.bf16.msra.mxu0 %v3233_v32  ;;  %1062 = vmatprep.subr.bf16.mxu1 %v3235_v35  ;;  %v2773_v32 = vld [vmem:[%s4413_s6] ss:$0 sm:$0xff] }
 0x10d   : > { %v726_v48 = vadd.f32 %v2763_v20, %v725_v45  ;;  %764 = vadd.xlane.f32.xlu0 %v3703_v44  ;;  %v3718_v52 = vadd.f32 %v744_v51, %v734_v49  ;;  %3016 = vmatprep.subr.bf16.mxu0 %v3237_v36  ;;  %v3246_v45 = vld [vmem:[%s4414_s7 + $0x18] ss:$12 sps:$4 sm:$0xff]   ;;  %v3250_v49 = vld [vmem:[%s4414_s7] ss:$12 sps:$4 sm:$0xff]   ;;  %v3490_v51 = vmov 0  }
 0x10e   : > { %1086 = vmatprep.mubr.bf16.mxu1 %v3490_v51 }
 0x10f   : > { %v3711_v50 = vadd.f32 %v742_v46, %v726_v48  ;;  %1063 = vmatpush1.bf16.msra.mxu1 %v3238_v38  ;;  %v3247_v46 = vld [vmem:[%s4414_s7 + $0x4] ss:$12 sps:$4 sm:$0xff]   ;;  %v3249_v48 = vld [vmem:[%s4414_s7 + $0x20] ss:$12 sps:$4 sm:$0xff]  }
 0x110   : > { %3017 = vmatpush3.bf16.msra.mxu0 %v3237_v36  ;;  %1064 = vmatprep.subr.bf16.mxu1 %v3239_v39 }
 0x111   : > { %766 = vadd.xlane.f32.xlu1 %v3711_v50  ;;  %768 = vadd.xlane.f32.xlu0 %v3708_v47 }
 0x112   : > { %3018 = vmatprep.subr.bf16.mxu0 %v3241_v40 }
 0x113   : > { %1065 = vmatpush1.bf16.msra.mxu1 %v3242_v41 }
 0x114   : > { %3019 = vmatpush3.bf16.msra.mxu0 %v3241_v40  ;;  %1066 = vmatprep.subr.bf16.mxu1 %v3243_v42 }
 0x115   : > { %770 = vadd.xlane.f32.xlu1 %v3718_v52  ;;  %3020 = vmatprep.subr.bf16.mxu0 %v3245_v43 }
 0x117   : > { %1067 = vmatpush1.bf16.msra.mxu1 %v3246_v45 }
 0x118   : > { %3021 = vmatpush3.bf16.msra.mxu0 %v3245_v43  ;;  %1068 = vmatprep.subr.bf16.mxu1 %v3247_v46 }
 0x119   : > { %3022 = vmatprep.subr.bf16.mxu0 %v3249_v48 }
 0x11b   : > { %1069 = vmatpush1.bf16.msra.mxu1 %v3250_v49 }
 0x11c   : > { %3023 = vmatpush3.bf16.msra.mxu0 %v3249_v48 }
 0x11d   : > { %3024 = vmatprep.subr.bf16.mxu0 %v3251_v53 }
 0x120   : > { %3025 = vmatpush3.bf16.msra.mxu0 %v3251_v53 }
 0x18c   : > { %v761_v55 = vpop.xlane.xlu1 %760 }
 0x18d   : > { %v775_v57 = vmul.f32 0.0078125, %v761_v55 }
 0x18e   : > { %v757_v56 = vpop.xlane.xlu0 %756 }
 0x18f   : > { %v773_v58 = vmul.f32 0.0078125, %v757_v56  ;;  %v3731_v62 = vsub.f32 %v3679_v26, %v775_v57 }
 0x190   : > { %v763_v59 = vpop.xlane.xlu1 %762 }
 0x191   : > { %v3728_v60 = vsub.f32 %v3684_v30, %v773_v58  ;;  %v776_v63 = vmul.f32 0.0078125, %v763_v59  ;;  %v791_v6 = vmul.f32 %v3731_v62, %v3731_v62 }
 0x192   : > { %v759_v61 = vpop.xlane.xlu0 %758 }
 0x193   : > { %v774_v0 = vmul.f32 0.0078125, %v759_v61  ;;  %v789_v1 = vmul.f32 %v3728_v60, %v3728_v60  ;;  %v3739_v4 = vsub.f32 %v3690_v34, %v776_v63 }
 0x195   : > { %v3736_v2 = vsub.f32 %v3693_v37, %v774_v0  ;;  %797 = vadd.xlane.f32.xlu0 %v789_v1  ;;  %v792_v13 = vmul.f32 %v3739_v4, %v3739_v4 }
 0x196   : > { %v765_v3 = vpop.xlane.xlu0 %764 }
 0x197   : > { %v777_v5 = vmul.f32 0.0078125, %v765_v3  ;;  %v790_v7 = vmul.f32 %v3736_v2, %v3736_v2 }
 0x199   : > { %v3746_v8 = vsub.f32 %v3703_v44, %v777_v5  ;;  %801 = vadd.xlane.f32.xlu0 %v791_v6  ;;  %799 = vadd.xlane.f32.xlu1 %v790_v7 }
 0x19a   : > { %v767_v9 = vpop.xlane.xlu1 %766  ;;  %v769_v10 = vpop.xlane.xlu0 %768 }
 0x19b   : > { %v778_v11 = vmul.f32 0.0078125, %v767_v9  ;;  %v779_v12 = vmul.f32 0.0078125, %v769_v10  ;;  %v793_v14 = vmul.f32 %v3746_v8, %v3746_v8 }
 0x19d   : > { %v3753_v15 = vsub.f32 %v3711_v50, %v778_v11  ;;  %v3756_v16 = vsub.f32 %v3708_v47, %v779_v12  ;;  %803 = vadd.xlane.f32.xlu1 %v792_v13  ;;  %805 = vadd.xlane.f32.xlu0 %v793_v14 }
 0x19e   : > { %v771_v17 = vpop.xlane.xlu1 %770 }
 0x19f   : > { %v780_v18 = vmul.f32 0.0078125, %v771_v17  ;;  %v794_v19 = vmul.f32 %v3753_v15, %v3753_v15  ;;  %v795_v20 = vmul.f32 %v3756_v16, %v3756_v16 }
 0x1a1   : > { %v3772_v24 = vsub.f32 %v3718_v52, %v780_v18  ;;  %807 = vadd.xlane.f32.xlu1 %v794_v19  ;;  %809 = vadd.xlane.f32.xlu0 %v795_v20 }
 0x1a3   : > { %v796_v25 = vmul.f32 %v3772_v24, %v3772_v24 }
 0x1a5   : > { %811 = vadd.xlane.f32.xlu1 %v796_v25 }
 0x21e   : > { %v798_v54 = vpop.xlane.xlu0 %797 }
 0x21f   : > { %v813_v55 = vmul.f32 0.0078125, %v798_v54 }
 0x221   : > { %v821_v56 = vadd.f32 1e-06, %v813_v55 }
 0x222   : > { %v800_v57 = vpop.xlane.xlu1 %799  ;;  %v802_v58 = vpop.xlane.xlu0 %801 }
 0x223   : > { %3300 = vrsqrt.f32 %v821_v56  ;;  %v814_v59 = vmul.f32 0.0078125, %v800_v57  ;;  %v815_v61 = vmul.f32 0.0078125, %v802_v58 }
 0x225   : > { %v822_v63 = vadd.f32 1e-06, %v814_v59  ;;  %v823_v0 = vadd.f32 1e-06, %v815_v61 }
 0x226   : > { %v804_v1 = vpop.xlane.xlu1 %803  ;;  %v806_v3 = vpop.xlane.xlu0 %805 }
 0x227   : > { %3302 = vrsqrt.f32 %v822_v63  ;;  %v816_v5 = vmul.f32 0.0078125, %v804_v1  ;;  %v817_v6 = vmul.f32 0.0078125, %v806_v3  ;;  %v909_v3 = vld [vmem:[%s4415_s8] sm:$0x7] }
 0x228   : > { %3304 = vrsqrt.f32 %v823_v0 }
 0x229   : > { %v824_v7 = vadd.f32 1e-06, %v816_v5  ;;  %v825_v9 = vadd.f32 1e-06, %v817_v6 }
 0x22a   : > { %v808_v10 = vpop.xlane.xlu1 %807  ;;  %v810_v11 = vpop.xlane.xlu0 %809 }
 0x22b   : > { %3306 = vrsqrt.f32 %v824_v7  ;;  %v818_v12 = vmul.f32 0.0078125, %v808_v10  ;;  %v819_v13 = vmul.f32 0.0078125, %v810_v11 }
 0x22c   : > { %3308 = vrsqrt.f32 %v825_v9 }
 0x22d   : > { %v826_v14 = vadd.f32 1e-06, %v818_v12  ;;  %v827_v17 = vadd.f32 1e-06, %v819_v13 }
 0x22e   : > { %v812_v18 = vpop.xlane.xlu1 %811 }
 0x22f   : > { %3310 = vrsqrt.f32 %v826_v14  ;;  %v820_v19 = vmul.f32 0.0078125, %v812_v18 }
 0x230   : > { %v3301_v20 = vpop.eup %3300  ;;  %3312 = vrsqrt.f32 %v827_v17 }
 0x231   : > { %v828_v21 = vadd.f32 1e-06, %v820_v19  ;;  %v837_v22 = vmul.f32 %v3301_v20, %v3728_v60 }
 0x233   : > { %3314 = vrsqrt.f32 %v828_v21  ;;  %v851_v29 = vmul.f32 %v2772_v23, %v837_v22 }
 0x234   : > { %v3303_v25 = vpop.eup %3302 }
 0x235   : > { %v3305_v27 = vpop.eup %3304  ;;  %v838_v28 = vmul.f32 %v3303_v25, %v3736_v2  ;;  %v865_v39 = vadd.f32 %v2773_v32, %v851_v29 }
 0x236   : > { %v839_v31 = vmul.f32 %v3305_v27, %v3731_v62 }
 0x237   : > { %v852_v33 = vmul.f32 %v2772_v23, %v838_v28 }
 0x238   : > { %v3307_v35 = vpop.eup %3306  ;;  %v853_v36 = vmul.f32 %v2772_v23, %v839_v31 }
 0x239   : > { %v3309_v60 = vpop.eup %3308  ;;  %v840_v38 = vmul.f32 %v3307_v35, %v3739_v4  ;;  %v866_v40 = vadd.f32 %v2773_v32, %v852_v33 }
 0x23a   : > { %v841_v41 = vmul.f32 %v3309_v60, %v3746_v8  ;;  %v867_v45 = vadd.f32 %v2773_v32, %v853_v36 }
 0x23b   : > { %v873_v42 = vpack.c.bf16 %v866_v40, %v865_v39  ;;  %v854_v43 = vmul.f32 %v2772_v23, %v840_v38 }
 0x23c   : > { %v3311_v2 = vpop.eup %3310  ;;  %v855_v49 = vmul.f32 %v2772_v23, %v841_v41 }
 0x23d   : > { %v3313_v46 = vpop.eup %3312  ;;  %1087 = vmatmul.mubr.bf16.vlgmr.msra.gmra.mxu1 %v873_v42  ;;  %3026 = vmatprep.mubr.bf16.mxu0 %v873_v42  ;;  %v868_v62 = vadd.f32 %v2773_v32, %v854_v43  ;;  %v842_v48 = vmul.f32 %v3311_v2, %v3753_v15 }
 0x23e   : > { %1096 = vmatprep.mubr.bf16.mxu1 %v3490_v51  ;;  %v843_v53 = vmul.f32 %v3313_v46, %v3756_v16  ;;  %v869_v8 = vadd.f32 %v2773_v32, %v855_v49  ;;  %v911_v16 = vlaneseq }
 0x23f   : > { %v874_v4 = vpack.c.bf16 %v868_v62, %v867_v45  ;;  %v856_v54 = vmul.f32 %v2772_v23, %v842_v48 }
 0x240   : > { %v3315_v55 = vpop.eup %3314  ;;  %v857_v58 = vmul.f32 %v2772_v23, %v843_v53  ;;  %v3851_v1 = vshrl.u32 %v911_v16, 7 }
 0x241   : > { %3027 = vmatmul.mubr.bf16.vlgmr.msra.gmra.mxu0 %v874_v4  ;;  %v870_v56 = vadd.f32 %v2773_v32, %v856_v54  ;;  %v844_v57 = vmul.f32 %v3315_v55, %v3772_v24 }
 0x242   : > { %v871_v63 = vadd.f32 %v2773_v32, %v857_v58  ;;  %v913_v24 = vsub.s32 0, %v3851_v1  ;;  %v917_v27 = vsub.s32 1, %v3851_v1  ;;  %v921_v55 = vsub.s32 2, %v3851_v1 }
 0x243   : > { %v875_v59 = vpack.c.bf16 %v870_v56, %v869_v8  ;;  %v858_v61 = vmul.f32 %v2772_v23, %v844_v57 }
 0x244   : > { %v3859_v6 = vrot.slane %v909_v3, %v913_v24  ;;  %v922_v58 = vrot.slane %v909_v3, %v921_v55 }
 0x245   : > { %1097 = vmatmul.mubr.bf16.gmra.mxu1 %v874_v4  ;;  %3030 = vmatprep.mubr.bf16.mxu0 %v875_v59  ;;  %v872_v15 = vadd.f32 %v2773_v32, %v858_v61  ;;  %v918_v32 = vrot.slane %v909_v3, %v917_v27 }
 0x246   : > { %1106 = vmatprep.mubr.bf16.mxu1 %v3490_v51 }
 0x247   : > { %v876_v0 = vpack.c.bf16 %v872_v15, %v871_v63 }
 0x249   : > { %3031 = vmatmul.mubr.bf16.gmra.mxu0 %v876_v0 }
 0x24d   : > { %1107 = vmatmul.mubr.bf16.gmra.mxu1 %v875_v59 }
 0x24e   : > { %1116 = vmatprep.mubr.bf16.mxu1 %v3490_v51 }
 0x255   : > { %1117 = vmatmul.mubr.bf16.gmra.mxu1 %v876_v0 }
 0x2fd   : > { %v1088_v5 = vpop.f32.mrf.mxu1 }
 0x2fe   : > { %v1089_v10 = vadd.f32 %v1088_v5, %v3859_v6 }
 0x2ff   : > { %v1090_v7 = vpop.f32.mrf.mxu1 }
 0x300   : > { %v1091_v54 = vadd.f32 %v1090_v7, %v918_v32 }
 0x301   : > { %v1092_v9 = vpop.f32.mrf.mxu1  ;;  %v3028_v29 = vpop.f32.mrf.mxu0 }
 0x302   : > { %v1093_v11 = vadd.f32 %v1092_v9, %v3859_v6 }
 0x303   : > { %v1094_v12 = vpop.f32.mrf.mxu1  ;;  %v1161_v38 = vpop.f32.mrf.mxu0 }
 0x304   : > { %v3863_v13 = vpack.c.bf16 %v1093_v11, %v1089_v10  ;;  %v1095_v53 = vadd.f32 %v1094_v12, %v918_v32 }
 0x305   : > { %v1098_v14 = vpop.f32.mrf.mxu1  ;;  %v3029_v43 = vpop.f32.mrf.mxu0 }
 0x306   : > { %3042 = vmatprep.mubr.msk.bf16.mxu1 %vm1204_vm0, %v3863_v13  ;;  %v3887_v8 = vpack.c.bf16 %v1095_v53, %v1091_v54  ;;  %v1099_v3 = vadd.f32 %v1098_v14, %v3859_v6  ;;  %v1170_v14 = vadd.f32 %v3028_v29, %v922_v58 }
 0x307   : > { %v1100_v17 = vpop.f32.mrf.mxu1  ;;  %v1164_v45 = vpop.f32.mrf.mxu0 }
 0x308   : > { %v1101_v46 = vadd.f32 %v1100_v17, %v918_v32  ;;  %v1218_v15 = vsel %vm1204_vm0, %v3887_v8, 0  ;;  %v1173_v17 = vadd.f32 %v3029_v43, %v922_v58 }
 0x309   : > { %v1102_v18 = vpop.f32.mrf.mxu1  ;;  %v3032_v49 = vpop.f32.mrf.mxu0 }
 0x30a   : > { %v1186_v61 = vadd.f32 %v3032_v49, %v922_v58  ;;  %v1103_v16 = vadd.f32 %v1102_v18, %v3859_v6 }
 0x30b   : > { %v1104_v19 = vpop.f32.mrf.mxu1  ;;  %v1177_v4 = vpop.f32.mrf.mxu0 }
 0x30c   : > { %v1105_v2 = vadd.f32 %v1104_v19, %v918_v32  ;;  %v3902_v10 = vpack.c.bf16 %v1103_v16, %v1099_v3  ;;  %v1178_v11 = vadd.f32 %v1177_v4, %v922_v58 }
 0x30d   : > { %v1108_v20 = vpop.f32.mrf.mxu1  ;;  %v3033_v57 = vpop.f32.mrf.mxu0 }
 0x30e   : > { %v3880_v62 = vpack.c.bf16 %v1105_v2, %v1101_v46  ;;  %v1189_v59 = vadd.f32 %v3033_v57, %v922_v58  ;;  %v1109_v9 = vadd.f32 %v1108_v20, %v3859_v6  ;;  %v3915_v20 = vpack.c.bf16 %v1173_v17, %v1170_v14 }
 0x30f   : > { %v1110_v21 = vpop.f32.mrf.mxu1  ;;  %v1180_v0 = vpop.f32.mrf.mxu0 }
 0x310   : > { %v1111_v39 = vadd.f32 %v1110_v21, %v918_v32  ;;  %v1221_v56 = vsel %vm1204_vm0, %v3880_v62, 0  ;;  %v3893_v63 = vpack.c.bf16 %v1189_v59, %v1186_v61  ;;  %v1181_v7 = vadd.f32 %v1180_v0, %v922_v58 }
 0x311   : > { %v1112_v22 = vpop.f32.mrf.mxu1  ;;  %v1165_v21 = vadd.f32 %v1164_v45, %v922_v58 }
 0x312   : > { %v1113_v5 = vadd.f32 %v1112_v22, %v3859_v6  ;;  %v3906_v19 = vpack.c.bf16 %v1181_v7, %v1178_v11 }
 0x313   : > { %v1114_v23 = vpop.f32.mrf.mxu1 }
 0x314   : > { %v1115_v35 = vadd.f32 %v1114_v23, %v918_v32  ;;  %v3904_v12 = vpack.c.bf16 %v1113_v5, %v1109_v9  ;;  %v1162_v23 = vadd.f32 %v1161_v38, %v922_v58 }
 0x315   : > { %v1118_v25 = vpop.f32.mrf.mxu1 }
 0x316   : > { %v3872_v41 = vpack.c.bf16 %v1115_v35, %v1111_v39  ;;  %v1119_v22 = vadd.f32 %v1118_v25, %v3859_v6 }
 0x317   : > { %v1120_v28 = vpop.f32.mrf.mxu1 }
 0x318   : > { %v1121_v36 = vadd.f32 %v1120_v28, %v918_v32  ;;  %v1224_v48 = vsel %vm1204_vm0, %v3872_v41, 0 }
 0x319   : > { %v1122_v31 = vpop.f32.mrf.mxu1 }
 0x31a   : > { %v1123_v18 = vadd.f32 %v1122_v31, %v3859_v6 }
 0x31b   : > { %v1124_v33 = vpop.f32.mrf.mxu1 }
 0x31c   : > { %v1125_v60 = vadd.f32 %v1124_v33, %v918_v32  ;;  %v3919_v28 = vpack.c.bf16 %v1123_v18, %v1119_v22  ;;  %v3922_v32 = vpack.c.bf16 %v1165_v21, %v1162_v23  ;;  %v3933_v33 = vld [vmem:[%s587_s30] ss:$0 sm:$0xff]  ;;  %s577_s30 = sand.u32 1, %s3480_s28  }
 0x31d   : > { %s2760_s24 = sshll.u32 %s577_s30, 4  ;;  %s4367_s27 = scalar_lea.sflag [#allocation3], %s577_s30 }
 0x31e   : > { %v3870_v40 = vpack.c.bf16 %v1125_v60, %v1121_v36  ;;  %s579_s18 = scalar_lea.vmem [#allocation2], %s2760_s24  ;;  %s3432_s24 = sshll.u32 %s3492_s0, 4  ;;  %s3433_s24 = int_to_ptr.vmem [resolvable:$false] %s3432_s24 }
 0x31f   : > { %s2685_s25 = sshll.u32 %s579_s18, 4  ;;  %s3434_s3 = scalar_lea.vmem %s3433_s24, 512  ;;  %s4360_s25 = int_to_ptr.vmem [resolvable:$true] %s2685_s25 }
 0x320   : > { %3141 = vmatprep.subr.msk.bf16.mxu1 %vm1204_vm0, %v3870_v40  ;;  %v1227_v42 = vsel %vm1204_vm0, %v3870_v40, 0  ;;  %s3428_s23 = scalar_lea.vmem %s4360_s25, 256  ;;  %p3435_p0 = scmp.lt.s32.totalorder %s4360_s25, %s3433_s24 }
 0x321   : > { %3035 = vmatpush3.bf16.xpose.msra.mxu1 %v1227_v42  ;;  %p3429_p11 = scmp.ne.s32.totalorder %s4360_s25, %s3428_s23  ;;  %p3436_p1 = scmp.lt.s32.totalorder %s3434_s3, %s3428_s23 }
 0x322   : > { %3142 = vmatprep.subr.msk.bf16.mxu1 %vm1204_vm0, %v3872_v41 }
 0x323   : > { %p3430_p12 = pnand %p3429_p11, %p3628_p5  ;;  %p3437_p2 = por %p3436_p1, %p3435_p0 }
 0x325   : > { %p3431_p13 = pneg %p3430_p12 }
 0x327   : > { %p3438_p3 = pnand %p3437_p2, %p3431_p13 }
 0x329   : > { %3037 = vmatpush3.bf16.xpose.msra.mxu1 %v1224_v48 }
 0x32a   : > { %3143 = vmatprep.subr.msk.bf16.mxu1 %vm1204_vm0, %v3880_v62 }
 0x331   : > { %3039 = vmatpush3.bf16.xpose.msra.mxu1 %v1221_v56 }
 0x332   : > { %3144 = vmatprep.subr.msk.bf16.mxu1 %vm1204_vm0, %v3887_v8 }
 0x339   : > { %3041 = vmatpush3.bf16.xpose.msra.mxu1 %v1218_v15 }
 0x33a   : > { %3050 = vmatprep.subr.bf16.mxu1 %v3893_v63 }
 0x340   : > { %3043 = vmatmul.mubr.msk.bf16.vlgmr.msra.gmra.mxu1 %vm1204_vm0, %v3902_v10 }
 0x341   : > { %3046 = vmatprep.mubr.msk.bf16.mxu1 %vm1204_vm0, %v3904_v12  ;;  %3051 = vmatpush3.bf16.msra.mxu1 %v3893_v63 }
 0x342   : > { %3052 = vmatprep.subr.bf16.mxu1 %v3906_v19 }
 0x345   : > { %3053 = vmatpush3.bf16.msra.mxu1 %v3906_v19 }
 0x346   : > { %3054 = vmatprep.subr.bf16.mxu1 %v3915_v20 }
 0x348   : > { %3047 = vmatmul.mubr.msk.bf16.gmra.mxu1 %vm1204_vm0, %v3919_v28 }
 0x349   : > { %3055 = vmatpush3.bf16.msra.mxu1 %v3915_v20 }
 0x34a   : > { %3056 = vmatprep.subr.bf16.mxu1 %v3922_v32 }
 0x34d   : > { %3057 = vmatpush3.bf16.msra.mxu1 %v3922_v32 }
 0x400   : > { %v3044_v29 = vpop.f32.mrf.mxu1 }
 0x401   : > { %v1296_v25 = vmul.f32 0.125, %v3044_v29 }
 0x402   : > { %v1263_v6 = vpop.f32.mrf.mxu1 }
 0x403   : > { %v1294_v31 = vmul.f32 0.125, %v1263_v6  ;;  %v1310_v43 = vadd.f32 %v3933_v33, %v1296_v25 }
 0x404   : > { %v3045_v35 = vpop.f32.mrf.mxu1 }
 0x405   : > { %v1308_v36 = vadd.f32 %v3933_v33, %v1294_v31  ;;  %v1297_v60 = vmul.f32 0.125, %v3045_v35  ;;  %v1322_v4 = vsel %vm1204_vm0, %v1310_v43, -inf }
 0x406   : > { %v1266_v38 = vpop.f32.mrf.mxu1 }
 0x407   : > { %v1295_v39 = vmul.f32 0.125, %v1266_v38  ;;  %v1316_v42 = vsel %vm1204_vm0, %v1308_v36, -inf  ;;  %v1311_v48 = vadd.f32 %v3933_v33, %v1297_v60 }
 0x408   : > { %1317 = vmax.xlane.f32.xlu0 %v1316_v42  ;;  %v3048_v2 = vpop.f32.mrf.mxu1 }
 0x409   : > { %v1309_v45 = vadd.f32 %v3933_v33, %v1295_v39  ;;  %v1300_v49 = vmul.f32 0.125, %v3048_v2  ;;  %v1325_v58 = vsel %vm1204_vm0, %v1311_v48, -inf }
 0x40a   : > { %v1279_v46 = vpop.f32.mrf.mxu1 }
 0x40b   : > { %v1298_v53 = vmul.f32 0.125, %v1279_v46  ;;  %v1319_v54 = vsel %vm1204_vm0, %v1309_v45, -inf  ;;  %v1314_v0 = vadd.f32 %v3933_v33, %v1300_v49 }
 0x40c   : > { %1323 = vmax.xlane.f32.xlu0 %v1322_v4  ;;  %1320 = vmax.xlane.f32.xlu1 %v1319_v54  ;;  %v3049_v55 = vpop.f32.mrf.mxu1 }
 0x40d   : > { %v1312_v56 = vadd.f32 %v3933_v33, %v1298_v53  ;;  %v1301_v59 = vmul.f32 0.125, %v3049_v55  ;;  %v1334_v5 = vsel %vm1204_vm0, %v1314_v0, -inf }
 0x40e   : > { %v1282_v57 = vpop.f32.mrf.mxu1 }
 0x40f   : > { %v1299_v61 = vmul.f32 0.125, %v1282_v57  ;;  %v1328_v15 = vsel %vm1204_vm0, %v1312_v56, -inf  ;;  %v1315_v7 = vadd.f32 %v3933_v33, %v1301_v59 }
 0x410   : > { %1326 = vmax.xlane.f32.xlu1 %v1325_v58  ;;  %1329 = vmax.xlane.f32.xlu0 %v1328_v15 }
 0x411   : > { %v1313_v16 = vadd.f32 %v3933_v33, %v1299_v61  ;;  %v1337_v9 = vsel %vm1204_vm0, %v1315_v7, -inf }
 0x413   : > { %v1331_v3 = vsel %vm1204_vm0, %v1313_v16, -inf }
 0x414   : > { %1335 = vmax.xlane.f32.xlu0 %v1334_v5  ;;  %1332 = vmax.xlane.f32.xlu1 %v1331_v3 }
 0x418   : > { %1338 = vmax.xlane.f32.xlu1 %v1337_v9 }
 0x491   : > { %v1318_v11 = vpop.xlane.xlu0 %1317 }
 0x492   : > { %v1340_v17 = vsub.f32 %v1308_v36, %v1318_v11 }
 0x494   : > { %v1348_v22 = vmul.f32 1.442695, %v1340_v17 }
 0x495   : > { %v1324_v14 = vpop.xlane.xlu0 %1323  ;;  %v1321_v18 = vpop.xlane.xlu1 %1320 }
 0x496   : > { %v1342_v21 = vsub.f32 %v1310_v43, %v1324_v14  ;;  %v1341_v29 = vsub.f32 %v1309_v45, %v1321_v18 }
 0x498   : > { %v1352_v23 = vmul.f32 1.442695, %v1342_v21  ;;  %v1350_v35 = vmul.f32 1.442695, %v1341_v29 }
 0x499   : > { %v1327_v6 = vpop.xlane.xlu1 %1326  ;;  %v1330_v25 = vpop.xlane.xlu0 %1329 }
 0x49a   : > { %3316 = vpow2.f32 %v1352_v23  ;;  %v1343_v31 = vsub.f32 %v1311_v48, %v1327_v6  ;;  %v1344_v38 = vsub.f32 %v1312_v56, %v1330_v25 }
 0x49b   : > { %3318 = vpow2.f32 %v1348_v22 }
 0x49c   : > { %v1354_v60 = vmul.f32 1.442695, %v1343_v31  ;;  %v1356_v2 = vmul.f32 1.442695, %v1344_v38 }
 0x49d   : > { %v1336_v39 = vpop.xlane.xlu0 %1335  ;;  %v1333_v59 = vpop.xlane.xlu1 %1332 }
 0x49e   : > { %3320 = vpow2.f32 %v1354_v60  ;;  %v1346_v42 = vsub.f32 %v1314_v0, %v1336_v39  ;;  %v1345_v0 = vsub.f32 %v1313_v16, %v1333_v59 }
 0x49f   : > { %3322 = vpow2.f32 %v1350_v35 }
 0x4a0   : > { %v1360_v36 = vmul.f32 1.442695, %v1346_v42  ;;  %v1358_v3 = vmul.f32 1.442695, %v1345_v0 }
 0x4a1   : > { %v1339_v61 = vpop.xlane.xlu1 %1338 }
 0x4a2   : > { %3324 = vpow2.f32 %v1360_v36  ;;  %v1347_v15 = vsub.f32 %v1315_v7, %v1339_v61 }
 0x4a3   : > { %3326 = vpow2.f32 %v1356_v2 }
 0x4a4   : > { %v1362_v5 = vmul.f32 1.442695, %v1347_v15 }
 0x4a6   : > { %3328 = vpow2.f32 %v1362_v5 }
 0x4a7   : > { %v3317_v43 = vpop.eup %3316  ;;  %3330 = vpow2.f32 %v1358_v3 }
 0x4a8   : > { %v1370_v46 = vsel %vm1204_vm0, %v3317_v43, 0.0  ;;  %v3319_v45 = vpop.eup %3318 }
 0x4a9   : > { %1371 = vadd.xlane.f32.xlu0 %v1370_v46  ;;  %v1364_v48 = vsel %vm1204_vm0, %v3319_v45, 0.0 }
 0x4ab   : > { %v3321_v49 = vpop.eup %3320 }
 0x4ac   : > { %v1373_v53 = vsel %vm1204_vm0, %v3321_v49, 0.0  ;;  %v3323_v4 = vpop.eup %3322 }
 0x4ad   : > { %1365 = vadd.xlane.f32.xlu0 %v1364_v48  ;;  %1374 = vadd.xlane.f32.xlu1 %v1373_v53  ;;  %v1367_v56 = vsel %vm1204_vm0, %v3323_v4, 0.0 }
 0x4af   : > { %v3954_v54 = vpop.eup %3324 }
 0x4b0   : > { %v1382_v55 = vsel %vm1204_vm0, %v3954_v54, 0.0  ;;  %v3959_v57 = vpop.eup %3326 }
 0x4b1   : > { %1383 = vadd.xlane.f32.xlu0 %v1382_v55  ;;  %1368 = vadd.xlane.f32.xlu1 %v1367_v56  ;;  %v1376_v58 = vsel %vm1204_vm0, %v3959_v57, 0.0 }
 0x4b5   : > { %1377 = vadd.xlane.f32.xlu0 %v1376_v58 }
 0x4c2   : > { %1505 = vrot.lane.b32.xlu1 %v3872_v41, %s3491_s21  ;;  %v3329_v41 = vpop.eup %3328 }
 0x4c3   : > { %v3331_v9 = vpop.eup %3330 }
 0x4c6   : > { %1503 = vrot.lane.b32.xlu1 %v3880_v62, %s3491_s21  ;;  %v1385_v62 = vsel %vm1204_vm0, %v3329_v41, 0.0 }
 0x4cb   : > { %1507 = vrot.lane.b32.xlu0 %v3870_v40, %s3491_s21  ;;  %v1379_v40 = vsel %vm1204_vm0, %v3331_v9, 0.0 }
 0x4cf   : > { %1489 = vrot.lane.b32.xlu0 %v3863_v13, %s3491_s21 }
 0x4d3   : > { %1493 = vrot.lane.b32.xlu0 %v3904_v12, %s3491_s21 }
 0x4ea   : > { %1386 = vadd.xlane.f32.xlu1 %v1385_v62 }
 0x4ee   : > { %1380 = vadd.xlane.f32.xlu1 %v1379_v40 }
 0x4ff   : > { %1501 = vrot.lane.b32.xlu1 %v3887_v8, %s3491_s21 }
 0x503   : > { %1491 = vrot.lane.b32.xlu1 %v3902_v10, %s3491_s21 }
 0x507   : > { %1495 = vrot.lane.b32.xlu1 %v3919_v28, %s3491_s21 }
 0x532   : > { %v1372_v13 = vpop.xlane.xlu0 %1371 }
 0x536   : > { %v1366_v12 = vpop.xlane.xlu0 %1365  ;;  %v1375_v16 = vpop.xlane.xlu1 %1374 }
 0x537   : > { %3332 = vrcp.f32 %v1375_v16 }
 0x538   : > { %3334 = vrcp.f32 %v1366_v12 }
 0x539   : > { %3336 = vrcp.f32 %v1372_v13 }
 0x53a   : > { %v1384_v7 = vpop.xlane.xlu0 %1383  ;;  %v1369_v11 = vpop.xlane.xlu1 %1368 }
 0x53b   : > { %3338 = vrcp.f32 %v1369_v11 }
 0x53e   : > { %v1378_v17 = vpop.xlane.xlu0 %1377  ;;  %v1506_v35 = vpop.permute.xlu1 %1505 }
 0x53f   : > { %v1528_v60 = vsel %vm1204_vm0, %v1506_v35, 0 }
 0x542   : > { %v1508_v14 = vpop.permute.xlu0 %1507  ;;  %v1504_v38 = vpop.permute.xlu1 %1503 }
 0x543   : > { %3145 = vmatprep.subr.msk.bf16.mxu1 %vm1204_vm0, %v1508_v14  ;;  %v1531_v31 = vsel %vm1204_vm0, %v1508_v14, 0  ;;  %v1525_v39 = vsel %vm1204_vm0, %v1504_v38, 0 }
 0x544   : > { %v3333_v8 = vpop.eup %3332 }
 0x545   : > { %v3335_v18 = vpop.eup %3334  ;;  %v1399_v22 = vmul.f32 %v3333_v8, %v3321_v49 }
 0x546   : > { %v3337_v21 = vpop.eup %3336  ;;  %v1396_v23 = vmul.f32 %v3335_v18, %v3319_v45  ;;  %v1490_v61 = vpop.permute.xlu0 %1489 }
 0x547   : > { %v1398_v29 = vmul.f32 %v3337_v21, %v3317_v43 }
 0x548   : > { %v3339_v10 = vpop.eup %3338 }
 0x549   : > { %v1397_v28 = vmul.f32 %v3339_v10, %v3323_v4  ;;  %v1405_v25 = vpack.c.bf16 %v1399_v22, %v1398_v29 }
 0x54a   : > { %v1494_v0 = vpop.permute.xlu0 %1493 }
 0x54b   : > { %v1404_v6 = vpack.c.bf16 %v1397_v28, %v1396_v23 }
 0x54d   : > { %3058 = vmatprep.mubr.msk.bf16.mxu1 %vm1204_vm0, %v1404_v6 }
 0x54e   : > { %3059 = vmatmul.mubr.msk.bf16.vlgmr.msra.gmra.mxu1 %vm1204_vm0, %v1405_v25 }
 0x54f   : > { %3067 = vmatpush3.bf16.xpose.msra.mxu1 %v1531_v31 }
 0x550   : > { %3146 = vmatprep.subr.msk.bf16.mxu1 %vm1204_vm0, %v1506_v35 }
 0x557   : > { %3069 = vmatpush3.bf16.xpose.msra.mxu1 %v1528_v60 }
 0x558   : > { %3147 = vmatprep.subr.msk.bf16.mxu1 %vm1204_vm0, %v1504_v38 }
 0x55f   : > { %3071 = vmatpush3.bf16.xpose.msra.mxu1 %v1525_v39 }
 0x573   : > { %v1387_v42 = vpop.xlane.xlu1 %1386 }
 0x574   : > { %3340 = vrcp.f32 %v1387_v42 }
 0x575   : > { %3342 = vrcp.f32 %v1378_v17 }
 0x576   : > { %3344 = vrcp.f32 %v1384_v7 }
 0x577   : > { %v1381_v2 = vpop.xlane.xlu1 %1380 }
 0x578   : > { %3346 = vrcp.f32 %v1381_v2 }
 0x57b   : > { %v1502_v36 = vpop.permute.xlu1 %1501 }
 0x57c   : > { %v1522_v43 = vsel %vm1204_vm0, %v1502_v36, 0  ;;  %3148 = vmatprep.subr.msk.bf16.mxu1 %vm1204_vm0, %v1502_v36 }
 0x57d   : > { %3073 = vmatpush3.bf16.xpose.msra.mxu1 %v1522_v43 }
 0x57f   : > { %v1492_v15 = vpop.permute.xlu1 %1491 }
 0x581   : > { %v3341_v46 = vpop.eup %3340 }
 0x582   : > { %v3343_v45 = vpop.eup %3342  ;;  %v1403_v53 = vmul.f32 %v3341_v46, %v3329_v41 }
 0x583   : > { %v3345_v49 = vpop.eup %3344  ;;  %v1400_v4 = vmul.f32 %v3343_v45, %v3959_v57  ;;  %v1496_v5 = vpop.permute.xlu1 %1495 }
 0x584   : > { %v1402_v56 = vmul.f32 %v3345_v49, %v3954_v54 }
 0x585   : > { %v3347_v48 = vpop.eup %3346 }
 0x586   : > { %v1401_v55 = vmul.f32 %v3347_v48, %v3331_v9  ;;  %v1407_v59 = vpack.c.bf16 %v1403_v53, %v1402_v56 }
 0x588   : > { %v1406_v58 = vpack.c.bf16 %v1401_v55, %v1400_v4 }
 0x58a   : > { %3062 = vmatprep.mubr.msk.bf16.mxu1 %vm1204_vm0, %v1406_v58 }
 0x58b   : > { %3063 = vmatmul.mubr.msk.bf16.gmra.mxu1 %vm1204_vm0, %v1407_v59 }
 0x58c   : > { %3074 = vmatprep.mubr.msk.bf16.mxu1 %vm1204_vm0, %v1490_v61 }
 0x593   : > { %3075 = vmatmul.mubr.msk.bf16.vlgmr.msra.gmra.mxu1 %vm1204_vm0, %v1492_v15 }
 0x594   : > { %3078 = vmatprep.mubr.msk.bf16.mxu1 %vm1204_vm0, %v1494_v0 }
 0x59b   : > { %3079 = vmatmul.mubr.msk.bf16.gmra.mxu1 %vm1204_vm0, %v1496_v5 }
 0x59c   : > { %2249 = vmatprep.mubr.bf16.mxu1 %v3490_v51 }
 0x60e   : > { %v4000_v54 = vpop.f32.mrf.mxu1 }
 0x610   : > { %v4002_v57 = vpop.f32.mrf.mxu1 }
 0x612   : > { %v4004_v3 = vpop.f32.mrf.mxu1 }
 0x614   : > { %v4006_v41 = vpop.f32.mrf.mxu1 }
 0x64b   : > { %v4008_v62 = vpop.f32.mrf.mxu1 }
 0x64d   : > { %v4010_v9 = vpop.f32.mrf.mxu1 }
 0x64f   : > { %v4012_v40 = vpop.f32.mrf.mxu1 }
 0x651   : > { %v4014_v13 = vpop.f32.mrf.mxu1 }
 0x653   : > { %v3076_v12 = vpop.f32.mrf.mxu1 }
 0x654   : > { %v1600_v7 = vmul.f32 0.125, %v3076_v12 }
 0x655   : > { %v1567_v16 = vpop.f32.mrf.mxu1 }
 0x656   : > { %v1598_v11 = vmul.f32 0.125, %v1567_v16  ;;  %v1608_v22 = vadd.f32 %v3933_v33, %v1600_v7 }
 0x657   : > { %v3077_v17 = vpop.f32.mrf.mxu1 }
 0x658   : > { %v1606_v14 = vadd.f32 %v3933_v33, %v1598_v11  ;;  %v1601_v18 = vmul.f32 0.125, %v3077_v17  ;;  %v1620_v25 = vsel %vm1204_vm0, %v1608_v22, -inf }
 0x659   : > { %v1570_v8 = vpop.f32.mrf.mxu1 }
 0x65a   : > { %v1599_v21 = vmul.f32 0.125, %v1570_v8  ;;  %v1614_v10 = vsel %vm1204_vm0, %v1606_v14, -inf  ;;  %v1609_v35 = vadd.f32 %v3933_v33, %v1601_v18 }
 0x65b   : > { %1615 = vmax.xlane.f32.xlu0 %v1614_v10  ;;  %v3080_v23 = vpop.f32.mrf.mxu1 }
 0x65c   : > { %v1607_v28 = vadd.f32 %v3933_v33, %v1599_v21  ;;  %v1604_v38 = vmul.f32 0.125, %v3080_v23  ;;  %v1623_v36 = vsel %vm1204_vm0, %v1609_v35, -inf }
 0x65d   : > { %v1583_v29 = vpop.f32.mrf.mxu1 }
 0x65e   : > { %v1602_v6 = vmul.f32 0.125, %v1583_v29  ;;  %v1617_v31 = vsel %vm1204_vm0, %v1607_v28, -inf  ;;  %v1612_v48 = vadd.f32 %v3933_v33, %v1604_v38 }
 0x65f   : > { %1621 = vmax.xlane.f32.xlu0 %v1620_v25  ;;  %1618 = vmax.xlane.f32.xlu1 %v1617_v31  ;;  %v3081_v60 = vpop.f32.mrf.mxu1 }
 0x660   : > { %v1605_v42 = vmul.f32 0.125, %v3081_v60  ;;  %v1610_v43 = vadd.f32 %v3933_v33, %v1602_v6  ;;  %v1632_v4 = vsel %vm1204_vm0, %v1612_v48, -inf }
 0x661   : > { %v1586_v39 = vpop.f32.mrf.mxu1 }
 0x662   : > { %v1603_v2 = vmul.f32 0.125, %v1586_v39  ;;  %v1626_v45 = vsel %vm1204_vm0, %v1610_v43, -inf  ;;  %v1613_v53 = vadd.f32 %v3933_v33, %v1605_v42 }
 0x663   : > { %1624 = vmax.xlane.f32.xlu0 %v1623_v36 }
 0x664   : > { %v1611_v46 = vadd.f32 %v3933_v33, %v1603_v2  ;;  %v1635_v55 = vsel %vm1204_vm0, %v1613_v53, -inf }
 0x666   : > { %v1629_v49 = vsel %vm1204_vm0, %v1611_v46, -inf }
 0x667   : > { %1627 = vmax.xlane.f32.xlu0 %v1626_v45  ;;  %1630 = vmax.xlane.f32.xlu1 %v1629_v49 }
 0x66b   : > { %1633 = vmax.xlane.f32.xlu0 %v1632_v4  ;;  %1636 = vmax.xlane.f32.xlu1 %v1635_v55 }
 0x681   : > { %1716 = vrot.lane.b32.xlu0 %v3893_v63, %s3491_s21 }
 0x6e4   : > { %v1616_v56 = vpop.xlane.xlu0 %1615 }
 0x6e5   : > { %v1638_v58 = vsub.f32 %v1606_v14, %v1616_v56 }
 0x6e7   : > { %v1646_v0 = vmul.f32 1.442695, %v1638_v58 }
 0x6e8   : > { %v1622_v59 = vpop.xlane.xlu0 %1621  ;;  %v1619_v61 = vpop.xlane.xlu1 %1618 }
 0x6e9   : > { %v1640_v15 = vsub.f32 %v1608_v22, %v1622_v59  ;;  %v1639_v12 = vsub.f32 %v1607_v28, %v1619_v61 }
 0x6eb   : > { %v1650_v5 = vmul.f32 1.442695, %v1640_v15  ;;  %v1648_v7 = vmul.f32 1.442695, %v1639_v12 }
 0x6ec   : > { %v1625_v33 = vpop.xlane.xlu0 %1624 }
 0x6ed   : > { %3348 = vpow2.f32 %v1650_v5  ;;  %v1641_v16 = vsub.f32 %v1609_v35, %v1625_v33 }
 0x6ee   : > { %3350 = vpow2.f32 %v1646_v0 }
 0x6ef   : > { %v1652_v11 = vmul.f32 1.442695, %v1641_v16 }
 0x6f0   : > { %v1628_v17 = vpop.xlane.xlu0 %1627  ;;  %v1631_v8 = vpop.xlane.xlu1 %1630 }
 0x6f1   : > { %3352 = vpow2.f32 %v1652_v11  ;;  %v1642_v18 = vsub.f32 %v1610_v43, %v1628_v17  ;;  %v1643_v6 = vsub.f32 %v1611_v46, %v1631_v8 }
 0x6f2   : > { %3354 = vpow2.f32 %v1648_v7 }
 0x6f3   : > { %v1654_v10 = vmul.f32 1.442695, %v1642_v18  ;;  %v1656_v38 = vmul.f32 1.442695, %v1643_v6 }
 0x6f4   : > { %v1634_v63 = vpop.xlane.xlu0 %1633  ;;  %v1637_v21 = vpop.xlane.xlu1 %1636 }
 0x6f5   : > { %v1644_v14 = vsub.f32 %v1612_v48, %v1634_v63  ;;  %v1645_v22 = vsub.f32 %v1613_v53, %v1637_v21 }
 0x6f7   : > { %v1658_v23 = vmul.f32 1.442695, %v1644_v14  ;;  %v1660_v25 = vmul.f32 1.442695, %v1645_v22 }
 0x6f8   : > { %v1717_v29 = vpop.permute.xlu0 %1716 }
 0x6f9   : > { %3356 = vpow2.f32 %v1658_v23  ;;  %3082 = vmatprep.subr.bf16.mxu0 %v1717_v29 }
 0x6fa   : > { %v4034_v28 = vpop.eup %3348  ;;  %3083 = vmatpush3.bf16.msra.mxu0 %v1717_v29  ;;  %3358 = vpow2.f32 %v1654_v10 }
 0x6fb   : > { %v1668_v31 = vsel %vm1204_vm0, %v4034_v28, 0.0  ;;  %v3351_v35 = vpop.eup %3350  ;;  %3360 = vpow2.f32 %v1660_v25 }
 0x6fc   : > { %1669 = vadd.xlane.f32.xlu0 %v1668_v31  ;;  %v1662_v39 = vsel %vm1204_vm0, %v3351_v35, 0.0  ;;  %3362 = vpow2.f32 %v1656_v38 }
 0x6fe   : > { %v3353_v60 = vpop.eup %3352 }
 0x6ff   : > { %v1671_v42 = vsel %vm1204_vm0, %v3353_v60, 0.0  ;;  %v3355_v2 = vpop.eup %3354 }
 0x700   : > { %1663 = vadd.xlane.f32.xlu0 %v1662_v39  ;;  %1672 = vadd.xlane.f32.xlu1 %v1671_v42  ;;  %v1665_v36 = vsel %vm1204_vm0, %v3355_v2, 0.0  ;;  %v3254_v42 = vld [vmem:[%s4416_s9 + $0x28] sm:$0xff]  }
 0x704   : > { %1666 = vadd.xlane.f32.xlu1 %v1665_v36  ;;  %v3256_v36 = vld [vmem:[%s4416_s9 + $0x18] sm:$0xff]  }
 0x706   : > { %v3357_v43 = vpop.eup %3356 }
 0x707   : > { %v1680_v46 = vsel %vm1204_vm0, %v3357_v43, 0.0  ;;  %v3359_v45 = vpop.eup %3358 }
 0x708   : > { %1681 = vadd.xlane.f32.xlu1 %v1680_v46  ;;  %v1674_v49 = vsel %vm1204_vm0, %v3359_v45, 0.0  ;;  %v3361_v48 = vpop.eup %3360  ;;  %v3258_v46 = vld [vmem:[%s4416_s9 + $0x8] sm:$0xff]  }
 0x709   : > { %v1683_v53 = vsel %vm1204_vm0, %v3361_v48, 0.0  ;;  %v3363_v4 = vpop.eup %3362 }
 0x70a   : > { %v1677_v55 = vsel %vm1204_vm0, %v3363_v4, 0.0 }
 0x70c   : > { %1675 = vadd.xlane.f32.xlu1 %v1674_v49 }
 0x710   : > { %1684 = vadd.xlane.f32.xlu1 %v1683_v53 }
 0x714   : > { %1678 = vadd.xlane.f32.xlu1 %v1677_v55 }
 0x716   : > { %1712 = vrot.lane.b32.xlu0 %v3915_v20, %s3491_s21 }
 0x71a   : > { %1710 = vrot.lane.b32.xlu0 %v3922_v32, %s3491_s21 }
 0x725   : > { %1714 = vrot.lane.b32.xlu1 %v3906_v19, %s3491_s21 }
 0x785   : > { %v1670_v56 = vpop.xlane.xlu0 %1669 }
 0x789   : > { %v1664_v58 = vpop.xlane.xlu0 %1663  ;;  %v1673_v59 = vpop.xlane.xlu1 %1672 }
 0x78a   : > { %3364 = vrcp.f32 %v1664_v58 }
 0x78d   : > { %v1667_v61 = vpop.xlane.xlu1 %1666  ;;  %v1713_v19 = vpop.permute.xlu0 %1712 }
 0x78e   : > { %3366 = vrcp.f32 %v1667_v61 }
 0x78f   : > { %3368 = vrcp.f32 %v1673_v59 }
 0x790   : > { %3370 = vrcp.f32 %v1670_v56 }
 0x791   : > { %v1682_v15 = vpop.xlane.xlu1 %1681  ;;  %v1711_v18 = vpop.permute.xlu0 %1710 }
 0x795   : > { %v1676_v0 = vpop.xlane.xlu1 %1675 }
 0x796   : > { %3372 = vrcp.f32 %v1676_v0 }
 0x797   : > { %v3365_v5 = vpop.eup %3364 }
 0x798   : > { %v1694_v20 = vmul.f32 %v3365_v5, %v3351_v35 }
 0x799   : > { %v1685_v12 = vpop.xlane.xlu1 %1684 }
 0x79b   : > { %v3367_v33 = vpop.eup %3366 }
 0x79c   : > { %v1695_v16 = vmul.f32 %v3367_v33, %v3355_v2  ;;  %v3369_v17 = vpop.eup %3368  ;;  %v3255_v2 = vld [vmem:[%s4416_s9 + $0x20] sm:$0xff]  }
 0x79d   : > { %v1679_v32 = vpop.xlane.xlu1 %1678  ;;  %v3371_v8 = vpop.eup %3370  ;;  %v1697_v63 = vmul.f32 %v3369_v17, %v3353_v60  ;;  %v3253_v60 = vld [vmem:[%s4416_s9 + $0x30] sm:$0xff]  }
 0x79e   : > { %3374 = vrcp.f32 %v1679_v32  ;;  %v1702_v7 = vpack.c.bf16 %v1695_v16, %v1694_v20  ;;  %v1696_v14 = vmul.f32 %v3371_v8, %v4034_v28  ;;  %v3252_v28 = vld [vmem:[%s4416_s9 + $0x38] sm:$0xff]  }
 0x79f   : > { %3376 = vrcp.f32 %v1685_v12 }
 0x7a0   : > { %3090 = vmatprep.mubr.msk.bf16.mxu0 %vm1204_vm0, %v1702_v7  ;;  %3378 = vrcp.f32 %v1682_v15  ;;  %v1703_v23 = vpack.c.bf16 %v1697_v63, %v1696_v14 }
 0x7a1   : > { %v1715_v11 = vpop.permute.xlu1 %1714 }
 0x7a2   : > { %3084 = vmatprep.subr.bf16.mxu0 %v1715_v11 }
 0x7a3   : > { %3085 = vmatpush3.bf16.msra.mxu0 %v1715_v11  ;;  %v3373_v21 = vpop.eup %3372 }
 0x7a4   : > { %3086 = vmatprep.subr.bf16.mxu0 %v1713_v19  ;;  %v1698_v22 = vmul.f32 %v3373_v21, %v3359_v45  ;;  %v3259_v45 = vld [vmem:[%s4416_s9] sm:$0xff]  }
 0x7a7   : > { %3087 = vmatpush3.bf16.msra.mxu0 %v1713_v19 }
 0x7a8   : > { %3088 = vmatprep.subr.bf16.mxu0 %v1711_v18 }
 0x7ab   : > { %v3375_v10 = vpop.eup %3374  ;;  %3089 = vmatpush3.bf16.msra.mxu0 %v1711_v18 }
 0x7ac   : > { %v1699_v29 = vmul.f32 %v3375_v10, %v3363_v4  ;;  %v3377_v6 = vpop.eup %3376  ;;  %3098 = vmatprep.subr.bf16.mxu0 %v3252_v28 }
 0x7ad   : > { %v3379_v31 = vpop.eup %3378  ;;  %v1701_v35 = vmul.f32 %v3377_v6, %v3361_v48 }
 0x7ae   : > { %3091 = vmatmul.mubr.msk.bf16.vlgmr.msra.gmra.mxu0 %vm1204_vm0, %v1703_v23  ;;  %v1704_v25 = vpack.c.bf16 %v1699_v29, %v1698_v22  ;;  %v1700_v38 = vmul.f32 %v3379_v31, %v3357_v43  ;;  %v3257_v43 = vld [vmem:[%s4416_s9 + $0x10] sm:$0xff]  }
 0x7af   : > { %3099 = vmatpush3.bf16.msra.mxu0 %v3252_v28 }
 0x7b0   : > { %3094 = vmatprep.mubr.msk.bf16.mxu0 %vm1204_vm0, %v1704_v25  ;;  %v1705_v39 = vpack.c.bf16 %v1701_v35, %v1700_v38  ;;  %3100 = vmatprep.subr.bf16.mxu0 %v3253_v60  ;;  %v2815_v35 = vld [vmem:[%s4417_s10] ss:$0 sm:$0xff] }
 0x7b3   : > { %3101 = vmatpush3.bf16.msra.mxu0 %v3253_v60 }
 0x7b4   : > { %3102 = vmatprep.subr.bf16.mxu0 %v3254_v42 }
 0x7b6   : > { %3095 = vmatmul.mubr.msk.bf16.gmra.mxu0 %vm1204_vm0, %v1705_v39 }
 0x7b7   : > { %3103 = vmatpush3.bf16.msra.mxu0 %v3254_v42 }
 0x7b8   : > { %3104 = vmatprep.subr.bf16.mxu0 %v3255_v2 }
 0x7bb   : > { %3105 = vmatpush3.bf16.msra.mxu0 %v3255_v2 }
 0x7bc   : > { %3106 = vmatprep.subr.bf16.mxu0 %v3256_v36 }
 0x7bf   : > { %3107 = vmatpush3.bf16.msra.mxu0 %v3256_v36 }
 0x7c0   : > { %3108 = vmatprep.subr.bf16.mxu0 %v3257_v43 }
 0x7c3   : > { %3109 = vmatpush3.bf16.msra.mxu0 %v3257_v43 }
 0x7c4   : > { %3110 = vmatprep.subr.bf16.mxu0 %v3258_v46 }
 0x7c7   : > { %3111 = vmatpush3.bf16.msra.mxu0 %v3258_v46 }
 0x7c8   : > { %3112 = vmatprep.subr.bf16.mxu0 %v3259_v45 }
 0x7cb   : > { %3113 = vmatpush3.bf16.msra.mxu0 %v3259_v45 }
 0x86e   : > { %v3092_v49 = vpop.f32.mrf.mxu0 }
 0x870   : > { %v1768_v48 = vpop.f32.mrf.mxu0 }
 0x872   : > { %v3093_v53 = vpop.f32.mrf.mxu0 }
 0x873   : > { %v3197_v4 = vpack.i.bf16 %v3093_v53, %v3092_v49 }
 0x874   : > { %v1771_v55 = vpop.f32.mrf.mxu0 }
 0x875   : > { %v3192_v56 = vpack.i.bf16 %v1771_v55, %v1768_v48  ;;  %3198 = vrot.lane.b32.xlu1 %v3197_v4, %s3491_s21 }
 0x876   : > { %v3096_v58 = vpop.f32.mrf.mxu0 }
 0x877   : > { %3193 = vrot.lane.b32.xlu0 %v3192_v56, %s3491_s21 }
 0x878   : > { %v1784_v59 = vpop.f32.mrf.mxu0 }
 0x87a   : > { %v3097_v61 = vpop.f32.mrf.mxu0 }
 0x87b   : > { %v3207_v15 = vpack.i.bf16 %v3097_v61, %v3096_v58 }
 0x87c   : > { %v1787_v0 = vpop.f32.mrf.mxu0 }
 0x87d   : > { %v3202_v5 = vpack.i.bf16 %v1787_v0, %v1784_v59  ;;  %3208 = vrot.lane.b32.xlu1 %v3207_v15, %s3491_s21 }
 0x87f   : > { %3203 = vrot.lane.b32.xlu0 %v3202_v5, %s3491_s21 }
 0x8e7   : > { %v3199_v12 = vpop.permute.xlu1 %3198 }
 0x8e8   : > { %v3201_v33 = vunpack.i.h.bf16 %v3199_v12  ;;  %v3200_v20 = vunpack.i.l.bf16 %v3199_v12 }
 0x8e9   : > { %v3194_v16 = vpop.permute.xlu0 %3193 }
 0x8ea   : > { %v3196_v32 = vunpack.i.h.bf16 %v3194_v16  ;;  %v3195_v7 = vunpack.i.l.bf16 %v3194_v16  ;;  %v1834_v19 = vsel %vm1204_vm0, %v4004_v3, %v3201_v33  ;;  %v1833_v11 = vsel %vm1204_vm0, %v4000_v54, %v3200_v20 }
 0x8eb   : > { %v1840_v63 = vpack.c.bf16 %v1834_v19, %v1833_v11 }
 0x8ec   : > { %v1831_v17 = vsel %vm1204_vm0, %v4002_v57, %v3195_v7  ;;  %v1832_v8 = vsel %vm1204_vm0, %v4006_v41, %v3196_v32 }
 0x8ed   : > { %v1839_v18 = vpack.c.bf16 %v1832_v8, %v1831_v17 }
 0x8ef   : > { %3114 = vmatprep.mubr.bf16.mxu0 %v1839_v18  ;;  %v3209_v21 = vpop.permute.xlu1 %3208 }
 0x8f0   : > { %v3211_v14 = vunpack.i.h.bf16 %v3209_v21  ;;  %v3210_v10 = vunpack.i.l.bf16 %v3209_v21  ;;  %3115 = vmatmul.mubr.bf16.vlgmr.msra.gmra.mxu0 %v1840_v63 }
 0x8f1   : > { %v3204_v23 = vpop.permute.xlu0 %3203 }
 0x8f2   : > { %v3206_v22 = vunpack.i.h.bf16 %v3204_v23  ;;  %v3205_v29 = vunpack.i.l.bf16 %v3204_v23  ;;  %v1837_v3 = vsel %vm1204_vm0, %v4008_v62, %v3210_v10  ;;  %v1838_v54 = vsel %vm1204_vm0, %v4012_v40, %v3211_v14 }
 0x8f3   : > { %v1842_v25 = vpack.c.bf16 %v1838_v54, %v1837_v3 }
 0x8f4   : > { %v1835_v57 = vsel %vm1204_vm0, %v4010_v9, %v3205_v29  ;;  %v1836_v41 = vsel %vm1204_vm0, %v4014_v13, %v3206_v22 }
 0x8f5   : > { %v1841_v6 = vpack.c.bf16 %v1836_v41, %v1835_v57  ;;  %v3265_v41 = vld [vmem:[%s4420_s13 + $0x64] ss:$8 sps:$4 sm:$0xff]  }
 0x8f7   : > { %3118 = vmatprep.mubr.bf16.mxu0 %v1841_v6  ;;  %v3263_v6 = vld [vmem:[%s4420_s13 + $0x60] ss:$8 sps:$4 sm:$0xff]  }
 0x8f8   : > { %3119 = vmatmul.mubr.bf16.gmra.mxu0 %v1842_v25 }
 0x9b0   : > { %v3116_v31 = vpop.f32.mrf.mxu0 }
 0x9b1   : > { %v1957_v28 = vadd.f32 %v3116_v31, %v2815_v35 }
 0x9b2   : > { %v1948_v38 = vpop.f32.mrf.mxu0 }
 0x9b3   : > { %v1949_v62 = vadd.f32 %v2815_v35, %v1948_v38  ;;  %v4108_v42 = vadd.f32 %v1957_v28, %v3679_v26  ;;  %v3266_v38 = vld [vmem:[%s4420_s13 + $0x50] ss:$8 sps:$4 sm:$0xff]   ;;  %v3274_v28 = vld [vmem:[%s4420_s13 + $0x34] ss:$8 sps:$4 sm:$0xff]  }
 0x9b4   : > { %v3117_v39 = vpop.f32.mrf.mxu0 }
 0x9b5   : > { %v4104_v40 = vadd.f32 %v1949_v62, %v3684_v30  ;;  %v1960_v2 = vadd.f32 %v3117_v39, %v2815_v35  ;;  %v3271_v62 = vld [vmem:[%s4420_s13 + $0x44] ss:$8 sps:$4 sm:$0xff]   ;;  %v3269_v39 = vld [vmem:[%s4420_s13 + $0x40] ss:$8 sps:$4 sm:$0xff]  }
 0x9b6   : > { %v1951_v9 = vpop.f32.mrf.mxu0 }
 0x9b7   : > { %v1952_v60 = vadd.f32 %v2815_v35, %v1951_v9  ;;  %1989 = vadd.xlane.f32.xlu0 %v4104_v40  ;;  %v4116_v30 = vadd.f32 %v1960_v2, %v3690_v34  ;;  %v3272_v9 = vld [vmem:[%s4420_s13 + $0x30] ss:$8 sps:$4 sm:$0xff]  }
 0x9b8   : > { %v3120_v13 = vpop.f32.mrf.mxu0  ;;  %v3278_v2 = vld [vmem:[%s4420_s13 + $0x10] ss:$8 sps:$4 sm:$0xff]  }
 0x9b9   : > { %v4111_v36 = vadd.f32 %v1952_v60, %v3693_v37  ;;  %v1973_v26 = vadd.f32 %v3120_v13, %v2815_v35  ;;  %v3277_v60 = vld [vmem:[%s4420_s13 + $0x24] ss:$8 sps:$4 sm:$0xff]   ;;  %v3275_v13 = vld [vmem:[%s4420_s13 + $0x20] ss:$8 sps:$4 sm:$0xff]  }
 0x9ba   : > { %v1964_v43 = vpop.f32.mrf.mxu0 }
 0x9bb   : > { %1991 = vadd.xlane.f32.xlu1 %v4111_v36  ;;  %1993 = vadd.xlane.f32.xlu0 %v4108_v42  ;;  %v1965_v45 = vadd.f32 %v2815_v35, %v1964_v43  ;;  %v4128_v34 = vadd.f32 %v1973_v26, %v3708_v47  ;;  %v3280_v43 = vld [vmem:[%s4420_s13 + $0x14] ss:$8 sps:$4 sm:$0xff]  }
 0x9bc   : > { %v3121_v46 = vpop.f32.mrf.mxu0 }
 0x9bd   : > { %v4120_v53 = vadd.f32 %v1965_v45, %v3703_v44  ;;  %v1976_v37 = vadd.f32 %v3121_v46, %v2815_v35  ;;  %v3260_v44 = vld [vmem:[%s4420_s13 + $0x70] ss:$8 sps:$4 sm:$0xff]   ;;  %v3283_v46 = vld [vmem:[%s4420_s13 + $0x4] ss:$8 sps:$4 sm:$0xff]   ;;  %v3281_v45 = vld [vmem:[%s4420_s13] ss:$8 sps:$4 sm:$0xff]  }
 0x9be   : > { %v1967_v49 = vpop.f32.mrf.mxu0 }
 0x9bf   : > { %v1968_v48 = vadd.f32 %v2815_v35, %v1967_v49  ;;  %1995 = vadd.xlane.f32.xlu0 %v4116_v30  ;;  %v4131_v55 = vadd.f32 %v1976_v37, %v3718_v52  ;;  %v3268_v35 = vld [vmem:[%s4420_s13 + $0x54] ss:$8 sps:$4 sm:$0xff]  }
 0x9c1   : > { %v4123_v4 = vadd.f32 %v1968_v48, %v3711_v50  ;;  %v3262_v50 = vld [vmem:[%s4420_s13 + $0x74] ss:$8 sps:$4 sm:$0xff]  }
 0x9c2   : > { %2217 = vmatprep.subr.bf16.mxu1 %v3262_v50 }
 0x9c3   : > { %1999 = vadd.xlane.f32.xlu1 %v4123_v4  ;;  %1997 = vadd.xlane.f32.xlu0 %v4120_v53 }
 0x9c4   : > { %2218 = vmatpush1.bf16.msra.mxu1 %v3260_v44 }
 0x9c5   : > { %2219 = vmatprep.subr.bf16.mxu1 %v3265_v41 }
 0x9c7   : > { %2003 = vadd.xlane.f32.xlu1 %v4131_v55  ;;  %2001 = vadd.xlane.f32.xlu0 %v4128_v34 }
 0x9c8   : > { %2220 = vmatpush1.bf16.msra.mxu1 %v3263_v6 }
 0x9c9   : > { %2221 = vmatprep.subr.bf16.mxu1 %v3268_v35 }
 0x9cc   : > { %2222 = vmatpush1.bf16.msra.mxu1 %v3266_v38 }
 0x9cd   : > { %2223 = vmatprep.subr.bf16.mxu1 %v3271_v62 }
 0x9d0   : > { %2224 = vmatpush1.bf16.msra.mxu1 %v3269_v39 }
 0x9d1   : > { %2225 = vmatprep.subr.bf16.mxu1 %v3274_v28 }
 0x9d4   : > { %2226 = vmatpush1.bf16.msra.mxu1 %v3272_v9 }
 0x9d5   : > { %2227 = vmatprep.subr.bf16.mxu1 %v3277_v60 }
 0x9d8   : > { %2228 = vmatpush1.bf16.msra.mxu1 %v3275_v13 }
 0x9d9   : > { %2229 = vmatprep.subr.bf16.mxu1 %v3280_v43 }
 0x9dc   : > { %2230 = vmatpush1.bf16.msra.mxu1 %v3278_v2 }
 0x9dd   : > { %2231 = vmatprep.subr.bf16.mxu1 %v3283_v46 }
 0x9e0   : > { %2232 = vmatpush1.bf16.msra.mxu1 %v3281_v45 }
 0xa40   : > { %v1990_v56 = vpop.xlane.xlu0 %1989 }
 0xa41   : > { %v2005_v47 = vmul.f32 0.0078125, %v1990_v56 }
 0xa43   : > { %v4142_v58 = vsub.f32 %v4104_v40, %v2005_v47 }
 0xa44   : > { %v1992_v52 = vpop.xlane.xlu1 %1991  ;;  %v1994_v59 = vpop.xlane.xlu0 %1993 }
 0xa45   : > { %v2006_v61 = vmul.f32 0.0078125, %v1992_v52  ;;  %v2007_v15 = vmul.f32 0.0078125, %v1994_v59  ;;  %v2021_v0 = vmul.f32 %v4142_v58, %v4142_v58 }
 0xa47   : > { %v4147_v5 = vsub.f32 %v4111_v36, %v2006_v61  ;;  %v4150_v12 = vsub.f32 %v4108_v42, %v2007_v15  ;;  %2029 = vadd.xlane.f32.xlu0 %v2021_v0 }
 0xa48   : > { %v1996_v33 = vpop.xlane.xlu0 %1995 }
 0xa49   : > { %v2008_v20 = vmul.f32 0.0078125, %v1996_v33  ;;  %v2022_v16 = vmul.f32 %v4147_v5, %v4147_v5  ;;  %v2023_v32 = vmul.f32 %v4150_v12, %v4150_v12 }
 0xa4b   : > { %v4157_v7 = vsub.f32 %v4116_v30, %v2008_v20  ;;  %2031 = vadd.xlane.f32.xlu1 %v2022_v16  ;;  %2033 = vadd.xlane.f32.xlu0 %v2023_v32 }
 0xa4c   : > { %v2000_v19 = vpop.xlane.xlu1 %1999  ;;  %v1998_v11 = vpop.xlane.xlu0 %1997 }
 0xa4d   : > { %v2010_v17 = vmul.f32 0.0078125, %v2000_v19  ;;  %v2009_v8 = vmul.f32 0.0078125, %v1998_v11  ;;  %v2024_v18 = vmul.f32 %v4157_v7, %v4157_v7 }
 0xa4f   : > { %v4162_v63 = vsub.f32 %v4123_v4, %v2010_v17  ;;  %v4165_v21 = vsub.f32 %v4120_v53, %v2009_v8  ;;  %2035 = vadd.xlane.f32.xlu1 %v2024_v18 }
 0xa50   : > { %v2004_v14 = vpop.xlane.xlu1 %2003  ;;  %v2002_v10 = vpop.xlane.xlu0 %2001 }
 0xa51   : > { %v2012_v23 = vmul.f32 0.0078125, %v2004_v14  ;;  %v2011_v22 = vmul.f32 0.0078125, %v2002_v10  ;;  %v2026_v29 = vmul.f32 %v4162_v63, %v4162_v63  ;;  %v2025_v3 = vmul.f32 %v4165_v21, %v4165_v21 }
 0xa53   : > { %v4172_v54 = vsub.f32 %v4131_v55, %v2012_v23  ;;  %v4175_v57 = vsub.f32 %v4128_v34, %v2011_v22  ;;  %2039 = vadd.xlane.f32.xlu1 %v2026_v29  ;;  %2037 = vadd.xlane.f32.xlu0 %v2025_v3  ;;  %v2824_v22 = vld [vmem:[%s4418_s11] ss:$0 sm:$0xff] }
 0xa55   : > { %v2028_v25 = vmul.f32 %v4172_v54, %v4172_v54  ;;  %v2027_v31 = vmul.f32 %v4175_v57, %v4175_v57 }
 0xa57   : > { %2043 = vadd.xlane.f32.xlu1 %v2028_v25  ;;  %2041 = vadd.xlane.f32.xlu0 %v2027_v31  ;;  %v2825_v31 = vld [vmem:[%s4419_s12] ss:$0 sm:$0xff] }
 0xad0   : > { %v2030_v49 = vpop.xlane.xlu0 %2029 }
 0xad1   : > { %v2045_v48 = vmul.f32 0.0078125, %v2030_v49 }
 0xad3   : > { %v2053_v26 = vadd.f32 1e-06, %v2045_v48 }
 0xad4   : > { %v2032_v37 = vpop.xlane.xlu1 %2031  ;;  %v2034_v44 = vpop.xlane.xlu0 %2033 }
 0xad5   : > { %3380 = vrsqrt.f32 %v2053_v26  ;;  %v2046_v50 = vmul.f32 0.0078125, %v2032_v37  ;;  %v2047_v56 = vmul.f32 0.0078125, %v2034_v44 }
 0xad7   : > { %v2054_v47 = vadd.f32 1e-06, %v2046_v50  ;;  %v2055_v52 = vadd.f32 1e-06, %v2047_v56 }
 0xad8   : > { %v2036_v59 = vpop.xlane.xlu1 %2035 }
 0xad9   : > { %3382 = vrsqrt.f32 %v2054_v47  ;;  %v2048_v61 = vmul.f32 0.0078125, %v2036_v59 }
 0xada   : > { %3384 = vrsqrt.f32 %v2055_v52 }
 0xadb   : > { %v2056_v15 = vadd.f32 1e-06, %v2048_v61 }
 0xadc   : > { %v2040_v0 = vpop.xlane.xlu1 %2039  ;;  %v2038_v33 = vpop.xlane.xlu0 %2037 }
 0xadd   : > { %3386 = vrsqrt.f32 %v2056_v15  ;;  %v2050_v20 = vmul.f32 0.0078125, %v2040_v0  ;;  %v2049_v16 = vmul.f32 0.0078125, %v2038_v33  ;;  %v3284_v0 = vld [vmem:[%s4422_s15 + $0x78] sm:$0xff]   ;;  %v3288_v33 = vld [vmem:[%s4422_s15 + $0x68] sm:$0xff]  }
 0xade   : > { %2936 = vmatprep.subr.bf16.mxu0 %v3284_v0 }
 0xadf   : > { %v2058_v32 = vadd.f32 1e-06, %v2050_v20  ;;  %v2057_v19 = vadd.f32 1e-06, %v2049_v16  ;;  %v3289_v20 = vld [vmem:[%s4422_s15 + $0x28] sm:$0xff]   ;;  %v3290_v16 = vld [vmem:[%s4422_s15 + $0x60] sm:$0xff]  }
 0xae0   : > { %v2044_v11 = vpop.xlane.xlu1 %2043  ;;  %v2042_v17 = vpop.xlane.xlu0 %2041 }
 0xae1   : > { %3388 = vrsqrt.f32 %v2058_v32  ;;  %v2052_v8 = vmul.f32 0.0078125, %v2044_v11  ;;  %v2051_v18 = vmul.f32 0.0078125, %v2042_v17  ;;  %v3291_v32 = vld [vmem:[%s4422_s15 + $0x20] sm:$0xff]   ;;  %v3293_v11 = vld [vmem:[%s4422_s15 + $0x18] sm:$0xff]   ;;  %v3294_v17 = vld [vmem:[%s4422_s15 + $0x50] sm:$0xff]  }
 0xae2   : > { %v3381_v14 = vpop.eup %3380  ;;  %3390 = vrsqrt.f32 %v2057_v19  ;;  %v3292_v19 = vld [vmem:[%s4422_s15 + $0x58] sm:$0xff]  }
 0xae3   : > { %v2069_v10 = vmul.f32 %v3381_v14, %v4142_v58  ;;  %v2060_v23 = vadd.f32 1e-06, %v2052_v8  ;;  %v2059_v29 = vadd.f32 1e-06, %v2051_v18  ;;  %v3295_v8 = vld [vmem:[%s4422_s15 + $0x10] sm:$0xff]   ;;  %v3296_v18 = vld [vmem:[%s4422_s15 + $0x48] sm:$0xff]  }
 0xae4   : > { %v3297_v14 = vld [vmem:[%s4422_s15 + $0x8] sm:$0xff]  }
 0xae5   : > { %v2083_v6 = vmul.f32 %v2824_v22, %v2069_v10  ;;  %3392 = vrsqrt.f32 %v2060_v23  ;;  %v3298_v10 = vld [vmem:[%s4422_s15 + $0x40] sm:$0xff]  }
 0xae6   : > { %v3383_v3 = vpop.eup %3382  ;;  %3394 = vrsqrt.f32 %v2059_v29  ;;  %v3299_v23 = vld [vmem:[%s4422_s15] sm:$0xff]  }
 0xae7   : > { %v2070_v41 = vmul.f32 %v3383_v3, %v4147_v5  ;;  %v3385_v25 = vpop.eup %3384  ;;  %v2097_v58 = vadd.f32 %v2825_v31, %v2083_v6 }
 0xae8   : > { %v2071_v39 = vmul.f32 %v3385_v25, %v4150_v12 }
 0xae9   : > { %v2084_v35 = vmul.f32 %v2824_v22, %v2070_v41 }
 0xaea   : > { %v3387_v38 = vpop.eup %3386  ;;  %v2085_v2 = vmul.f32 %v2824_v22, %v2071_v39 }
 0xaeb   : > { %v2098_v62 = vadd.f32 %v2825_v31, %v2084_v35  ;;  %v2072_v28 = vmul.f32 %v3387_v38, %v4157_v7 }
 0xaec   : > { %v2099_v49 = vadd.f32 %v2825_v31, %v2085_v2 }
 0xaed   : > { %v2105_v9 = vpack.c.bf16 %v2098_v62, %v2097_v58  ;;  %v2086_v60 = vmul.f32 %v2824_v22, %v2072_v28 }
 0xaee   : > { %v3389_v13 = vpop.eup %3388 }
 0xaef   : > { %v3391_v5 = vpop.eup %3390  ;;  %2250 = vmatmul.mubr.bf16.vlgmr.msra.gmra.mxu1 %v2105_v9  ;;  %v2100_v43 = vadd.f32 %v2825_v31, %v2086_v60  ;;  %v2074_v45 = vmul.f32 %v3389_v13, %v4162_v63 }
 0xaf0   : > { %2259 = vmatprep.mubr.bf16.mxu1 %v3490_v51  ;;  %v2073_v46 = vmul.f32 %v3391_v5, %v4165_v21 }
 0xaf1   : > { %v2106_v26 = vpack.c.bf16 %v2100_v43, %v2099_v49  ;;  %v2088_v12 = vmul.f32 %v2824_v22, %v2074_v45 }
 0xaf2   : > { %v3393_v48 = vpop.eup %3392  ;;  %v2087_v37 = vmul.f32 %v2824_v22, %v2073_v46 }
 0xaf3   : > { %v3395_v44 = vpop.eup %3394  ;;  %v2102_v50 = vadd.f32 %v2825_v31, %v2088_v12  ;;  %v2076_v47 = vmul.f32 %v3393_v48, %v4172_v54  ;;  %v3286_v54 = vld [vmem:[%s4422_s15 + $0x70] sm:$0xff]  }
 0xaf4   : > { %v2101_v7 = vadd.f32 %v2825_v31, %v2087_v37  ;;  %v2075_v56 = vmul.f32 %v3395_v44, %v4175_v57  ;;  %v3285_v57 = vld [vmem:[%s4422_s15 + $0x38] sm:$0xff]  }
 0xaf5   : > { %v2090_v21 = vmul.f32 %v2824_v22, %v2076_v47  ;;  %2937 = vmatpush3.bf16.msra.mxu0 %v3285_v57 }
 0xaf6   : > { %v2107_v52 = vpack.c.bf16 %v2102_v50, %v2101_v7  ;;  %v2089_v59 = vmul.f32 %v2824_v22, %v2075_v56  ;;  %2938 = vmatprep.subr.bf16.mxu0 %v3286_v54  ;;  %v2125_v22 = vld [vmem:[%s4421_s14] sm:$0x3] }
 0xaf7   : > { %2260 = vmatmul.mubr.bf16.gmra.mxu1 %v2106_v26  ;;  %v2104_v61 = vadd.f32 %v2825_v31, %v2090_v21  ;;  %v4293_v29 = vrot.slane %v2125_v22, %v913_v24  ;;  %v4297_v3 = vrot.slane %v2125_v22, %v917_v27 }
 0xaf8   : > { %2269 = vmatprep.mubr.bf16.mxu1 %v3490_v51  ;;  %v2103_v63 = vadd.f32 %v2825_v31, %v2089_v59 }
 0xafa   : > { %v2108_v15 = vpack.c.bf16 %v2104_v61, %v2103_v63 }
 0xaff   : > { %2270 = vmatmul.mubr.bf16.gmra.mxu1 %v2107_v52 }
 0xb00   : > { %2279 = vmatprep.mubr.bf16.mxu1 %v3490_v51  ;;  %v3287_v51 = vld [vmem:[%s4422_s15 + $0x30] sm:$0xff]  }
 0xb01   : > { %2939 = vmatpush3.bf16.msra.mxu0 %v3287_v51 }
 0xb02   : > { %2940 = vmatprep.subr.bf16.mxu0 %v3288_v33 }
 0xb05   : > { %2941 = vmatpush3.bf16.msra.mxu0 %v3289_v20 }
 0xb06   : > { %2942 = vmatprep.subr.bf16.mxu0 %v3290_v16 }
 0xb07   : > { %2280 = vmatmul.mubr.bf16.gmra.mxu1 %v2108_v15 }
 0xb09   : > { %2943 = vmatpush3.bf16.msra.mxu0 %v3291_v32 }
 0xb0a   : > { %2944 = vmatprep.subr.bf16.mxu0 %v3292_v19 }
 0xb0d   : > { %2945 = vmatpush3.bf16.msra.mxu0 %v3293_v11 }
 0xb0e   : > { %2946 = vmatprep.subr.bf16.mxu0 %v3294_v17 }
 0xb11   : > { %2947 = vmatpush3.bf16.msra.mxu0 %v3295_v8 }
 0xb12   : > { %2948 = vmatprep.subr.bf16.mxu0 %v3296_v18 }
 0xb15   : > { %2949 = vmatpush3.bf16.msra.mxu0 %v3297_v14 }
 0xb16   : > { %2950 = vmatprep.subr.bf16.mxu0 %v3298_v10 }
 0xb19   : > { %2951 = vmatpush3.bf16.msra.mxu0 %v3299_v23 }
 0xbaf   : > { %v2251_v41 = vpop.f32.mrf.mxu1 }
 0xbb0   : > { %v2252_v6 = vadd.f32 %v2251_v41, %v4293_v29 }
 0xbb1   : > { %v2253_v25 = vpop.f32.mrf.mxu1 }
 0xbb2   : > { %v2254_v31 = vadd.f32 %v2253_v25, %v4297_v3  ;;  %v2306_v35 = vmul.f32 0.70710677, %v2252_v6  ;;  %v2290_v8 = vmul.f32 0.5, %v2252_v6 }
 0xbb3   : > { %v2255_v38 = vpop.f32.mrf.mxu1 }
 0xbb4   : > { %v2307_v58 = vmul.f32 0.70710677, %v2254_v31  ;;  %v2256_v62 = vadd.f32 %v2255_v38, %v4293_v29  ;;  %v2291_v63 = vmul.f32 0.5, %v2254_v31 }
 0xbb5   : > { %v2257_v39 = vpop.f32.mrf.mxu1 }
 0xbb6   : > { %3396 = verf.f32 %v2307_v58  ;;  %v2308_v28 = vmul.f32 0.70710677, %v2256_v62  ;;  %v2258_v24 = vadd.f32 %v2257_v39, %v4297_v3  ;;  %v2292_v20 = vmul.f32 0.5, %v2256_v62 }
 0xbb7   : > { %3398 = verf.f32 %v2306_v35  ;;  %v2261_v1 = vpop.f32.mrf.mxu1 }
 0xbb8   : > { %3400 = verf.f32 %v2308_v28  ;;  %v2309_v27 = vmul.f32 0.70710677, %v2258_v24  ;;  %v4304_v9 = vadd.f32 %v2261_v1, %v4293_v29  ;;  %v2293_v19 = vmul.f32 0.5, %v2258_v24 }
 0xbb9   : > { %v2263_v60 = vpop.f32.mrf.mxu1 }
 0xbba   : > { %3402 = verf.f32 %v2309_v27  ;;  %v4307_v13 = vadd.f32 %v2263_v60, %v4297_v3  ;;  %v2310_v5 = vmul.f32 0.70710677, %v4304_v9 }
 0xbbb   : > { %v2265_v2 = vpop.f32.mrf.mxu1 }
 0xbbc   : > { %v2311_v43 = vmul.f32 0.70710677, %v4307_v13  ;;  %v2266_v46 = vadd.f32 %v2265_v2, %v4293_v29 }
 0xbbd   : > { %v2267_v45 = vpop.f32.mrf.mxu1 }
 0xbbe   : > { %3404 = verf.f32 %v2311_v43  ;;  %v2312_v49 = vmul.f32 0.70710677, %v2266_v46  ;;  %v2268_v48 = vadd.f32 %v2267_v45, %v4297_v3  ;;  %v2296_v45 = vmul.f32 0.5, %v2266_v46 }
 0xbbf   : > { %3406 = verf.f32 %v2310_v5  ;;  %v2271_v26 = vpop.f32.mrf.mxu1 }
 0xbc0   : > { %3408 = verf.f32 %v2312_v49  ;;  %v2313_v37 = vmul.f32 0.70710677, %v2268_v48  ;;  %v4314_v12 = vadd.f32 %v2271_v26, %v4293_v29  ;;  %v2295_v26 = vmul.f32 0.5, %v4307_v13 }
 0xbc1   : > { %v2273_v44 = vpop.f32.mrf.mxu1 }
 0xbc2   : > { %3410 = verf.f32 %v2313_v37  ;;  %v2314_v7 = vmul.f32 0.70710677, %v4314_v12  ;;  %v4318_v56 = vadd.f32 %v2273_v44, %v4297_v3  ;;  %v2294_v44 = vmul.f32 0.5, %v4304_v9 }
 0xbc3   : > { %v3397_v50 = vpop.eup %3396  ;;  %v2275_v47 = vpop.f32.mrf.mxu1 }
 0xbc4   : > { %v3399_v52 = vpop.eup %3398  ;;  %v4321_v59 = vadd.f32 %v2275_v47, %v4293_v29  ;;  %v2315_v61 = vmul.f32 0.70710677, %v4318_v56  ;;  %v2339_v0 = vadd.f32 1.0, %v3397_v50  ;;  %3412 = verf.f32 %v2314_v7 }
 0xbc5   : > { %v3401_v21 = vpop.eup %3400  ;;  %v2277_v15 = vpop.f32.mrf.mxu1  ;;  %v2338_v33 = vadd.f32 1.0, %v3399_v52  ;;  %v2299_v9 = vmul.f32 0.5, %v4318_v56 }
 0xbc6   : > { %v2340_v57 = vadd.f32 1.0, %v3401_v21  ;;  %v2316_v54 = vmul.f32 0.70710677, %v4321_v59  ;;  %3414 = verf.f32 %v2315_v61  ;;  %v2278_v16 = vadd.f32 %v2277_v15, %v4297_v3 }
 0xbc7   : > { %v3403_v51 = vpop.eup %3402  ;;  %v2281_v32 = vpop.f32.mrf.mxu1  ;;  %v2355_v23 = vmul.f32 %v2339_v0, %v2291_v63  ;;  %v2354_v25 = vmul.f32 %v2338_v33, %v2290_v8 }
 0xbc8   : > { %v2341_v11 = vadd.f32 1.0, %v3403_v51  ;;  %3416 = verf.f32 %v2316_v54  ;;  %v4327_v17 = vadd.f32 %v2281_v32, %v4293_v29  ;;  %v2356_v18 = vmul.f32 %v2340_v57, %v2292_v20 }
 0xbc9   : > { %v2317_v14 = vmul.f32 0.70710677, %v2278_v16  ;;  %v2283_v10 = vpop.f32.mrf.mxu1  ;;  %v2300_v54 = vmul.f32 0.5, %v4321_v59  ;;  %v2301_v51 = vmul.f32 0.5, %v2278_v16  ;;  %v2298_v20 = vmul.f32 0.5, %v4314_v12 }
 0xbca   : > { %v2357_v22 = vmul.f32 %v2341_v11, %v2293_v19  ;;  %v2318_v31 = vmul.f32 0.70710677, %v4327_v17  ;;  %v2284_v35 = vadd.f32 %v2283_v10, %v4297_v3  ;;  %v2370_v24 = vpack.c.bf16 %v2356_v18, %v2354_v25 }
 0xbcb   : > { %v3405_v41 = vpop.eup %3404  ;;  %3418 = verf.f32 %v2317_v14  ;;  %v2285_v38 = vpop.f32.mrf.mxu1  ;;  %v2302_v12 = vmul.f32 0.5, %v4327_v17 }
 0xbcc   : > { %v3407_v58 = vpop.eup %3406  ;;  %v2286_v62 = vadd.f32 %v2285_v38, %v4293_v29  ;;  %v2371_v39 = vpack.c.bf16 %v2357_v22, %v2355_v23  ;;  %v2319_v6 = vmul.f32 0.70710677, %v2284_v35  ;;  %v2343_v27 = vadd.f32 1.0, %v3405_v41 }
 0xbcd   : > { %v3409_v28 = vpop.eup %3408  ;;  %v2287_v1 = vpop.f32.mrf.mxu1  ;;  %3420 = verf.f32 %v2318_v31  ;;  %v2342_v43 = vadd.f32 1.0, %v3407_v58  ;;  %v2297_v29 = vmul.f32 0.5, %v2268_v48  ;;  %v2303_v56 = vmul.f32 0.5, %v2284_v35 }
 0xbce   : > { %v2344_v60 = vadd.f32 1.0, %v3409_v28  ;;  %v2320_v5 = vmul.f32 0.70710677, %v2286_v62  ;;  %2545 = vmatprep.mubr.bf16.mxu0 %v2371_v39  ;;  %3422 = verf.f32 %v2319_v6  ;;  %v2288_v49 = vadd.f32 %v2287_v1, %v4297_v3 }
 0xbcf   : > { %v3411_v2 = vpop.eup %3410  ;;  %2546 = vmatmul.mubr.bf16.vlgmr.msra.gmra.mxu0 %v2370_v24  ;;  %v2359_v47 = vmul.f32 %v2343_v27, %v2295_v26  ;;  %v2358_v63 = vmul.f32 %v2342_v43, %v2294_v44  ;;  %v2304_v38 = vmul.f32 0.5, %v2286_v62 }
 0xbd0   : > { %v2345_v37 = vadd.f32 1.0, %v3411_v2  ;;  %3424 = verf.f32 %v2320_v5  ;;  %v2360_v7 = vmul.f32 %v2344_v60, %v2296_v45  ;;  %v2321_v50 = vmul.f32 0.70710677, %v2288_v49  ;;  %v2586_v60 = vld [vmem:[%s4424_s17] sm:$0xff] }
 0xbd1   : > { %v3413_v21 = vpop.eup %3412  ;;  %v2305_v16 = vmul.f32 0.5, %v2288_v49  ;;  %3138 = vmatprep.mubr.msk.f32.mxu1 %vm1204_vm0, %v2586_v60 }
 0xbd2   : > { %v2361_v52 = vmul.f32 %v2345_v37, %v2297_v29  ;;  %3426 = verf.f32 %v2321_v50  ;;  %v2372_v0 = vpack.c.bf16 %v2360_v7, %v2358_v63  ;;  %v2346_v48 = vadd.f32 1.0, %v3413_v21 }
 0xbd3   : > { %v3415_v61 = vpop.eup %3414 }
 0xbd4   : > { %v2373_v46 = vpack.c.bf16 %v2361_v52, %v2359_v47  ;;  %v2347_v57 = vadd.f32 1.0, %v3415_v61  ;;  %v2362_v14 = vmul.f32 %v2346_v48, %v2298_v20 }
 0xbd5   : > { %v3417_v15 = vpop.eup %3416 }
 0xbd6   : > { %v2348_v3 = vadd.f32 1.0, %v3417_v15  ;;  %2553 = vmatprep.mubr.bf16.mxu0 %v2373_v46  ;;  %v2363_v11 = vmul.f32 %v2347_v57, %v2299_v9  ;;  %v2842_v46 = vld [vmem:[%s4423_s16] ss:$0 sm:$0xff] }
 0xbd7   : > { %2554 = vmatmul.mubr.bf16.gmra.mxu0 %v2372_v0 }
 0xbd8   : > { %v3419_v13 = vpop.eup %3418  ;;  %v2364_v32 = vmul.f32 %v2348_v3, %v2300_v54 }
 0xbd9   : > { %v2349_v33 = vadd.f32 1.0, %v3419_v13 }
 0xbda   : > { %v3421_v19 = vpop.eup %3420  ;;  %v2374_v41 = vpack.c.bf16 %v2364_v32, %v2362_v14 }
 0xbdb   : > { %v2365_v8 = vmul.f32 %v2349_v33, %v2301_v51  ;;  %v3423_v18 = vpop.eup %3422  ;;  %v2350_v59 = vadd.f32 1.0, %v3421_v19 }
 0xbdc   : > { %v2351_v25 = vadd.f32 1.0, %v3423_v18 }
 0xbdd   : > { %v3425_v10 = vpop.eup %3424  ;;  %v2375_v23 = vpack.c.bf16 %v2365_v8, %v2363_v11  ;;  %v2366_v6 = vmul.f32 %v2350_v59, %v2302_v12 }
 0xbde   : > { %v2352_v22 = vadd.f32 1.0, %v3425_v10  ;;  %v2367_v28 = vmul.f32 %v2351_v25, %v2303_v56 }
 0xbdf   : > { %2561 = vmatprep.mubr.bf16.mxu0 %v2375_v23  ;;  %v3427_v31 = vpop.eup %3426 }
 0xbe0   : > { %2562 = vmatmul.mubr.bf16.gmra.mxu0 %v2374_v41  ;;  %v2353_v58 = vadd.f32 1.0, %v3427_v31  ;;  %v2368_v39 = vmul.f32 %v2352_v22, %v2304_v38 }
 0xbe2   : > { %v2369_v24 = vmul.f32 %v2353_v58, %v2305_v16  ;;  %v2376_v27 = vpack.c.bf16 %v2368_v39, %v2366_v6 }
 0xbe4   : > { %v2377_v1 = vpack.c.bf16 %v2369_v24, %v2367_v28 }
 0xbe6   : > { %2569 = vmatprep.mubr.bf16.mxu0 %v2377_v1 }
 0xbe8   : > { %2570 = vmatmul.mubr.bf16.gmra.mxu0 %v2376_v27 }
 0xc8f   : > { %v2952_v62 = vpop.f32.mrf.mxu0 }
 0xc91   : > { %v2953_v35 = vpop.f32.mrf.mxu0 }
 0xc92   : > { %v2954_v19 = vadd.f32 %v2953_v35, %v2952_v62 }
 0xc93   : > { %v2955_v5 = vpop.f32.mrf.mxu0 }
 0xc95   : > { %v2956_v2 = vpop.f32.mrf.mxu0 }
 0xc96   : > { %v2957_v33 = vadd.f32 %v2956_v2, %v2955_v5 }
 0xc97   : > { %v2958_v43 = vpop.f32.mrf.mxu0 }
 0xc98   : > { %v2551_v18 = vadd.f32 %v2957_v33, %v2842_v46 }
 0xc99   : > { %v2959_v17 = vpop.f32.mrf.mxu0 }
 0xc9a   : > { %v2960_v54 = vadd.f32 %v2959_v17, %v2958_v43 }
 0xc9b   : > { %v2961_v45 = vpop.f32.mrf.mxu0 }
 0xc9c   : > { %v2556_v11 = vadd.f32 %v2960_v54, %v2842_v46 }
 0xc9d   : > { %v2962_v49 = vpop.f32.mrf.mxu0 }
 0xc9e   : > { %v2963_v57 = vadd.f32 %v2962_v49, %v2961_v45  ;;  %v2580_v14 = vadd.f32 %v2556_v11, %v4108_v42 }
 0xca0   : > { %v2964_v26 = vpop.f32.mrf.mxu0  ;;  %v2559_v20 = vadd.f32 %v2963_v57, %v2842_v46 }
 0xca2   : > { %v2965_v29 = vpop.f32.mrf.mxu0 }
 0xca3   : > { %v2966_v15 = vadd.f32 %v2965_v29, %v2964_v26 }
 0xca4   : > { %v2967_v37 = vpop.f32.mrf.mxu0 }
 0xca5   : > { %v2564_v9 = vadd.f32 %v2966_v15, %v2842_v46 }
 0xca6   : > { %v2968_v44 = vpop.f32.mrf.mxu0 }
 0xca7   : > { %v2969_v63 = vadd.f32 %v2968_v44, %v2967_v37  ;;  %v2582_v8 = vadd.f32 %v2564_v9, %v4120_v53 }
 0xca8   : > { %v2970_v7 = vpop.f32.mrf.mxu0 }
 0xca9   : > { %v2567_v13 = vadd.f32 %v2969_v63, %v2842_v46 }
 0xcaa   : > { %v2971_v50 = vpop.f32.mrf.mxu0 }
 0xcab   : > { %v2972_v52 = vadd.f32 %v2971_v50, %v2970_v7  ;;  %v2583_v32 = vadd.f32 %v2567_v13, %v4123_v4  ;;  %v2579_v4 = vadd.f32 %v2551_v18, %v4111_v36 }
 0xcac   : > { %v2973_v47 = vpop.f32.mrf.mxu0 }
 0xcad   : > { %v2572_v0 = vadd.f32 %v2972_v52, %v2842_v46 }
 0xcae   : > { %v2974_v21 = vpop.f32.mrf.mxu0 }
 0xcaf   : > { %v2975_v61 = vadd.f32 %v2974_v21, %v2973_v47  ;;  %v2584_v51 = vadd.f32 %v2572_v0, %v4128_v34  ;;  %v2548_v34 = vadd.f32 %v2954_v19, %v2842_v46 }
 0xcb1   : > { %v2575_v3 = vadd.f32 %v2975_v61, %v2842_v46  ;;  %v2578_v53 = vadd.f32 %v2548_v34, %v4104_v40 }
 0xcb3   : > { %v2585_v48 = vadd.f32 %v2575_v3, %v4131_v55  ;;  %v2581_v55 = vadd.f32 %v2559_v20, %v4116_v30  ;;  %v2587_v30 = vld [vmem:[%s4424_s17 + $0x8] sm:$0xff] }
 0xcb5   : > { %3122 = vmatprep.subr.mxu1 %v2585_v48 }
 0xcb6   : > { %3123 = vmatpush3.msra.mxu1 %v2585_v48 }
 0xcb7   : > { %3124 = vmatprep.subr.mxu1 %v2584_v51 }
 0xcb8   : > { %3125 = vmatpush3.msra.mxu1 %v2584_v51 }
 0xcb9   : > { %3126 = vmatprep.subr.mxu1 %v2583_v32 }
 0xcba   : > { %3127 = vmatpush3.msra.mxu1 %v2583_v32 }
 0xcbb   : > { %3128 = vmatprep.subr.mxu1 %v2582_v8 }
 0xcbc   : > { %3129 = vmatpush3.msra.mxu1 %v2582_v8 }
 0xcbd   : > { %3130 = vmatprep.subr.mxu1 %v2581_v55 }
 0xcbe   : > { %3131 = vmatpush3.msra.mxu1 %v2581_v55 }
 0xcbf   : > { %3132 = vmatprep.subr.mxu1 %v2580_v14 }
 0xcc0   : > { %3133 = vmatpush3.msra.mxu1 %v2580_v14 }
 0xcc1   : > { %3134 = vmatprep.subr.mxu1 %v2579_v4 }
 0xcc2   : > { %3135 = vmatpush3.msra.mxu1 %v2579_v4 }
 0xcc3   : > { %3136 = vmatprep.subr.mxu1 %v2578_v53 }
 0xcc4   : > { %3137 = vmatpush3.msra.mxu1 %v2578_v53 }
 0xcc5   : > { %3139 = vmatmul.mubr.msk.f32.vlgmr.msra.gmra.mxu1 %vm1204_vm0, %v2587_v30 }
 0xd85   : > { %v3140_v42 = vpop.f32.mrf.mxu1 }
 0xd86   : > { %2670 = vst [vmem:[%s579_s18 + $0x8] sm:$0xff] %v3140_v42 }
 0xd87   : > { %v2660_v40 = vpop.f32.mrf.mxu1 }
 0xd88   : > { %2669 = vst [vmem:[%s579_s18] sm:$0xff] %v2660_v40 }
 0xd89   : > { %3441 = shalt.err (!%p3438_p3)
}
 0xd8a   : > { %s3442_s30 = scalar_lea.hbm %s4365_s1, 256  ;;  %s3446_s20 = scalar_lea.hbm %s4452_s22, 1536 }
 0xd8b   : > { %p3443_p4 = scmp.ne.s32.totalorder %s4365_s1, %s3442_s30  ;;  %p3447_p9 = scmp.lt.s32.totalorder %s4365_s1, %s4452_s22 }
 0xd8c   : > { %p3448_p10 = scmp.lt.s32.totalorder %s3446_s20, %s3442_s30 }
 0xd8d   : > { %p3444_p7 = pnand %p3443_p4, %p3628_p5 }
 0xd8e   : > { %p3449_p11 = por %p3448_p10, %p3447_p9 }
 0xd8f   : > { %p3445_p8 = pneg %p3444_p7 }
 0xd91   : > { %p3450_p12 = pnand %p3449_p11, %p3445_p8 }
 0xd93   : > { %3453 = shalt.err (!%p3450_p12)
}
 0xd94   : > { %s3493_s3 = smov 128   ;;  %s3494_s23 = smov 8  }
 0xd95   : > { %3149 = dma.vmem_to_hbm [thread:$0]  (%p3628_p5), %s4360_s25, 256, %s4365_s1, %s4367_s27, %s3493_s3, %s3493_s3, %s3494_s23  }
 0xd96 PF: > { %s4453_s0 = sld [smem:[#allocation7_spill]] }
 0xd97   : > { %s4454_s24 = sld [smem:[#allocation5_spill]] }
 0xd9c   : > { %p3155_p13 = scmp.ge.s32.totalorder %s4453_s0, 2 }
 0xd9d   : > { %s2700_s19 = sand.u32 1, %s4454_s24  }
 0xd9e   : > { %p3152_p0 = pnand %p3155_p13, %p3632_p6  ;;  %s2701_s30 = scalar_lea.sflag [#allocation3], %s2700_s19 }
 0xda0   : > { %p3153_p1 = pneg %p3152_p0 }
 0xda2   : > { %3471 = dma.done.wait (%p3153_p1), %s2701_s30, 256  }
 0xda3   : > { %3473 = vsyncadd (%p3153_p1), %s2701_s30, 4294967040  ;;  %s4456_s30 = sld [smem:[#allocation8_spill]]  ;;  %s4459_s27 = smov %s3480_s28 }
 0xda4   : > { %s4457_s20 = sld [smem:[#allocation6_spill]] }
 0xda5   : > { %s4458_s29 = sld [smem:[#allocation9_spill]] }
 0xda9   : > { %p28_p2 = scmp.ge.s32.totalorder %s4456_s30, 8  }
 0xdaa   : > { %s4460_s28 = smov %s4457_s20 }
 0xdab   :  { %30 = sbr.rel (!%p28_p2) target bundleno = 9 (0x9), region = 130 }
 0xdb0   :  { %2706 = vsyncpa [#allocation3], 1 }
 0xdb1   :  { %2708 = vsyncpa [#allocation3 + $0x1], 1 }

</bundles_post_ra>
